<compile_context>
chip_gen: v5e
topology: v5e:2x2
jax: 0.10.0
libtpu: 0.0.40
codegen_flags: <defaults>
</compile_context>

<pallas_src>
import functools

import jax
import jax.numpy as jnp
import numpy as np
from jax.experimental import pallas as pl
from jax.experimental.pallas import tpu as pltpu


# ----------------------------- config ---------------------------------------
CFG = dict(
    seed=0,
    act_size=128,
    dict_size=256,
    l1_coeff=1e-3,
    l0_epsilon=1e-2,
    n_batches_to_dead=5.0,
    input_unit_norm=True,
    dtype=jnp.float32,
    use_bf16_matmul=True,        # bf16 MXU operands, f32 accumulation
    output_dtype=jnp.bfloat16,   # sae_out / feature_acts storage dtype
)

_STATS_LANES = 128                       # lane-dense packed per-tile stats row
_L2, _L0, _L0SQ, _L0E = 0, 1, 2, 3       # lane slots inside the stats row


def _round_up(x, m):
    return ((x + m - 1) // m) * m


def _choose_batch_tile(B, act_size, dict_size, x_bytes, out_bytes, w_bytes,
                       row_align=8, vmem_budget_bytes=12 << 20):
    """Largest batch tile whose block footprint fits a conservative VMEM
    budget (safe on v5e/v6e/v7x), while keeping >=2 (ideally 4) grid steps
    for v7x's two TensorCores when the batch is large enough."""
    # weights/biases are grid-invariant (single-buffered via pl.Buffered(1))
    weight_bytes = 2 * act_size * dict_size * w_bytes + (act_size + dict_size) * 4
    # per-row: double-buffered x / sae_out / acts blocks + f32 temporaries
    per_row = 2 * (act_size * x_bytes + (act_size + dict_size) * out_bytes)
    per_row += 4 * (2 * dict_size + 3 * act_size)          # f32 headroom
    avail = max(vmem_budget_bytes - weight_bytes, per_row * row_align)
    tb = min(avail // per_row, 2048)
    tb = max(row_align, (tb // row_align) * row_align)
    tb = min(tb, _round_up(B, row_align))
    # v7x megacore: keep >=2/4 grid steps once tiles can stay >= 128 rows.
    if B >= 4 * 128:
        tb = min(tb, max(128, _round_up(-(-B // 4), row_align)))
    elif B >= 2 * 128:
        tb = min(tb, max(128, _round_up(-(-B // 2), row_align)))
    return tb


# ----------------------------- kernel ---------------------------------------
def _sae_kernel(x_ref, w_enc_ref, b_enc_ref, w_dec_ref, b_dec_ref,
                sae_out_ref, acts_ref, colsum_ref, stats_ref,
                *, input_unit_norm: bool, l0_epsilon: float, batch: int):
    batch_tile, act_size = x_ref.shape
    x = x_ref[...].astype(jnp.float32)                       # (TB, A)

    # -- preprocess_input (torch.std is unbiased, ddof=1) ---------------------
    if input_unit_norm:
        x_mean = jnp.mean(x, axis=-1, keepdims=True)
        x_c = x - x_mean
        x_var = jnp.sum(x_c * x_c, axis=-1, keepdims=True) / (act_size - 1)
        x_std = jnp.sqrt(x_var)
        # one EUP reciprocal per row instead of act_size VALU divides per row
        inv_std = pl.reciprocal(x_std + 1e-5, approx=True)
        x_n = x_c * inv_std
    else:
        x_n = x

    b_dec = b_dec_ref[...].astype(jnp.float32)               # (1, A)
    b_enc = b_enc_ref[...].astype(jnp.float32)               # (1, D)

    # -- encoder: acts = relu((x - b_dec) @ W_enc + b_enc) --------------------
    x_cent = x_n - b_dec
    pre = jnp.dot(x_cent.astype(w_enc_ref.dtype), w_enc_ref[...],
                  preferred_element_type=jnp.float32) + b_enc
    acts = jnp.maximum(pre, 0.0)                              # (TB, D) f32

    # -- decoder: x_reconstruct = acts @ W_dec + b_dec ------------------------
    x_rec = jnp.dot(acts.astype(w_dec_ref.dtype), w_dec_ref[...],
                    preferred_element_type=jnp.float32) + b_dec

    # -- postprocess_output ----------------------------------------------------
    sae_out = x_rec * x_std + x_mean if input_unit_norm else x_rec
    sae_out_ref[...] = sae_out.astype(sae_out_ref.dtype)
    acts_ref[...] = acts.astype(acts_ref.dtype)

    # -- per-tile loss statistics (lane-dense outputs) -------------------------
    # Ragged last block: rows past `batch` read undefined data (possibly
    # NaN/Inf), so stats must use a jnp.where mask, not a multiply.
    ragged = (batch % batch_tile) != 0
    if ragged:
        row0 = pl.program_id(0) * batch_tile
        rows = row0 + jax.lax.broadcasted_iota(jnp.int32, (batch_tile, 1), 0)
        valid = rows < batch                                   # (TB, 1) bool

        def _mask(v):
            return jnp.where(valid, v, 0.0)
    else:
        def _mask(v):
            return v

    diff = x_rec - x_n                                         # l2 vs preprocessed x
    l2_row = _mask(jnp.sum(diff * diff, axis=-1, keepdims=True))
    l0_row = _mask(jnp.sum((acts > 0.0).astype(jnp.float32), axis=-1,
                           keepdims=True))
    l0e_row = _mask(jnp.sum((acts > l0_epsilon).astype(jnp.float32), axis=-1,
                            keepdims=True))

    # acts column-sum: feeds update_inactive_features AND (since acts >= 0)
    # sum_l1 host-side — the explicit abs()/l1 lane reduction was redundant.
    acts_for_colsum = jnp.where(valid, acts, 0.0) if ragged else acts
    colsum_ref[...] = jnp.sum(acts_for_colsum, axis=0, keepdims=True)[None]

    # pack the per-tile scalar sums into one 128-lane row (no width-1 stores)
    lane = jax.lax.broadcasted_iota(jnp.int32, (1, 1, _STATS_LANES), 2)
    stats = (jnp.where(lane == _L2, jnp.sum(l2_row), 0.0)
             + jnp.where(lane == _L0, jnp.sum(l0_row), 0.0)
             + jnp.where(lane == _L0SQ, jnp.sum(l0_row * l0_row), 0.0)
             + jnp.where(lane == _L0E, jnp.sum(l0e_row), 0.0))
    stats_ref[...] = stats


# ----------------------------- wrapper ----------------------------------------
def vanilla_sae_forward(x, params, num_batches_not_active, cfg, batch_tile=None):
    B, act_size = x.shape
    dict_size = params['W_enc'].shape[1]
    use_bf16_mm = bool(cfg.get('use_bf16_matmul', True))
    input_unit_norm = bool(cfg.get('input_unit_norm', False))
    out_dtype = jnp.dtype(cfg.get('output_dtype', jnp.bfloat16))

    mm_dtype = jnp.dtype(jnp.bfloat16 if use_bf16_mm else params['W_enc'].dtype)
    w_enc = params['W_enc'].astype(mm_dtype)
    w_dec = params['W_dec'].astype(mm_dtype)
    b_enc = params['b_enc'].astype(jnp.float32)[None, :]
    b_dec = params['b_dec'].astype(jnp.float32)[None, :]

    # keep row blocks aligned to the packed sublane count of the narrowest dtype
    row_align = 16 if (out_dtype.itemsize < 4 or x.dtype.itemsize < 4) else 8
    if batch_tile is None:
        TB = _choose_batch_tile(B, act_size, dict_size, x.dtype.itemsize,
                                out_dtype.itemsize, mm_dtype.itemsize, row_align)
    else:
        TB = _round_up(batch_tile, row_align)
    num_tiles = -(-B // TB)   # ragged last block handled in-kernel; no pad copy

    kernel = functools.partial(
        _sae_kernel,
        input_unit_norm=input_unit_norm,
        l0_epsilon=float(cfg['l0_epsilon']),
        batch=B,
    )

    out_shapes = (
        jax.ShapeDtypeStruct((B, act_size), out_dtype),                   # sae_out
        jax.ShapeDtypeStruct((B, dict_size), out_dtype),                  # feature_acts
        jax.ShapeDtypeStruct((num_tiles, 1, dict_size), jnp.float32),     # acts col-sums
        jax.ShapeDtypeStruct((num_tiles, 1, _STATS_LANES), jnp.float32),  # packed stats
    )

    bytes_accessed = (B * act_size * x.dtype.itemsize
                      + 2 * act_size * dict_size * mm_dtype.itemsize
                      + (act_size + dict_size) * 4
                      + B * (act_size + dict_size) * out_dtype.itemsize
                      + num_tiles * (dict_size + _STATS_LANES) * 4)
    cost = pl.CostEstimate(flops=4 * B * act_size * dict_size,
                           transcendentals=(2 * B if input_unit_norm else 0),
                           bytes_accessed=int(bytes_accessed))

    # TODO(synk): for production dict_size (>=8K) add a D grid axis (tile W_enc
    # columns / W_dec rows, accumulate x_rec in a VMEM f32 scratch); here we
    # only cap TB as f(act_size, dict_size) against the VMEM budget.
    def _call(single_buffer_weights: bool):
        def const_spec(shape):
            kw = {'pipeline_mode': pl.Buffered(1)} if single_buffer_weights else {}
            return pl.BlockSpec(shape, lambda i: (0,) * len(shape), **kw)

        row_spec = lambda last: pl.BlockSpec((TB, last), lambda i: (i, 0))
        tile_spec = lambda last: pl.BlockSpec((1, 1, last), lambda i: (i, 0, 0))

        grid_spec = pltpu.PrefetchScalarGridSpec(
            num_scalar_prefetch=0,
            grid=(num_tiles,),
            in_specs=[
                row_spec(act_size),                                  # x
                const_spec((act_size, dict_size)),                   # W_enc
                const_spec((1, dict_size)),                          # b_enc
                const_spec((dict_size, act_size)),                   # W_dec
                const_spec((1, act_size)),                           # b_dec
            ],
            out_specs=[
                row_spec(act_size),                                  # sae_out
                row_spec(dict_size),                                 # feature_acts
                tile_spec(dict_size),                                # col sums
                tile_spec(_STATS_LANES),                             # packed stats
            ],
        )
        return pl.pallas_call(
            kernel,
            out_shape=out_shapes,
            grid_spec=grid_spec,
            compiler_params=pltpu.CompilerParams(
                dimension_semantics=("parallel",),
                vmem_limit_bytes=64 * 1024 * 1024),
            cost_estimate=cost,
        )(x, w_enc, b_enc, w_dec, b_dec)

    try:
        sae_out, acts, colsum, stats = _call(True)
    except Exception:
        # pipeline_mode=pl.Buffered(1) is a pure VMEM optimization for the
        # grid-invariant weight blocks; fall back to default double-buffering
        # if this jax/libtpu build rejects it.
        sae_out, acts, colsum, stats = _call(False)

    # ------------------ scalar finalization (plain JAX glue) -----------------
    s = jnp.sum(stats, axis=(0, 1))                       # (128,)
    sum_l2, sum_l0 = s[_L2], s[_L0]
    sum_l0sq, sum_l0e = s[_L0SQ], s[_L0E]
    acts_col_sum = jnp.sum(colsum, axis=(0, 1))           # (dict_size,)
    sum_l1 = jnp.sum(acts_col_sum)                        # acts >= 0 ⇒ sum == sum|.|
    n = jnp.float32(B)

    l2_loss = sum_l2 / (n * act_size)
    l1_norm = sum_l1 / n
    l1_loss = cfg['l1_coeff'] * l1_norm
    l0_norm = sum_l0 / n
    l0_norm_epsilon = sum_l0e / n
    l1_norm_per_feature = sum_l1 / jnp.maximum(sum_l0, 1.0)
    # torch uses the explicit population form mean((l0_row - mean_l0)^2);
    # E[c^2]-E[c]^2 matches it; clamp guards f32 cancellation.
    activation_variance = jnp.maximum(sum_l0sq / n - l0_norm * l0_norm, 0.0)
    loss = l2_loss + l1_loss

    # update_inactive_features (stateful buffer in torch; returned functionally)
    new_nbna = jnp.where(acts_col_sum > 0.0, 0.0, num_batches_not_active + 1.0)
    # torch updates num_batches_not_active *before* get_loss_dict
    num_dead_features = (
        jnp.sum((new_nbna > cfg['n_batches_to_dead']).astype(jnp.float32))
        / dict_size)

    output = {
        'sae_out': sae_out,
        'feature_acts': acts,
        'num_dead_features': num_dead_features,
        'loss': loss,
        'l1_loss': l1_loss,
        'l2_loss': l2_loss,
        'l0_norm': l0_norm,
        'l0_norm_epsilon': l0_norm_epsilon,
        'l1_norm': l1_norm,
        'l1_norm_per_feature': l1_norm_per_feature,
        'activation_variance': activation_variance,
    }
    return output, new_nbna


# ----------------------------- param init -------------------------------------
def init_params(cfg):
    key = jax.random.PRNGKey(cfg['seed'])
    act_size, dict_size = cfg['act_size'], cfg['dict_size']
    # kaiming_uniform_ on (act_size, dict_size): fan_in = dict_size -> bound sqrt(6/fan_in)
    bound = np.sqrt(6.0 / dict_size)
    W_enc = jax.random.uniform(key, (act_size, dict_size), cfg['dtype'],
                               minval=-bound, maxval=bound)
    W_dec = W_enc.T
    W_dec = W_dec / jnp.linalg.norm(W_dec, axis=-1, keepdims=True)
    return dict(
        W_enc=W_enc,
        W_dec=W_dec.astype(cfg['dtype']),
        b_enc=jnp.zeros((dict_size,), cfg['dtype']),
        b_dec=jnp.zeros((act_size,), cfg['dtype']),
    )


# ----------------------------- reference (pure JAX) ----------------------------
def reference_forward(x, params, cfg):
    use_bf16 = bool(cfg.get('use_bf16_matmul', True))
    mm_dtype = jnp.bfloat16 if use_bf16 else jnp.float32
    x = x.astype(jnp.float32)
    if cfg.get('input_unit_norm', False):
        m = jnp.mean(x, -1, keepdims=True)
        xc = x - m
        s = jnp.sqrt(jnp.sum(xc * xc, -1, keepdims=True) / (x.shape[-1] - 1))
        xn = xc / (s + 1e-5)
    else:
        m, s, xn = 0.0, 1.0, x
    b_dec = params['b_dec'].astype(jnp.float32)
    b_enc = params['b_enc'].astype(jnp.float32)
    x_cent = xn - b_dec
    acts = jax.nn.relu(
        jnp.dot(x_cent.astype(mm_dtype), params['W_enc'].astype(mm_dtype),
                preferred_element_type=jnp.float32) + b_enc)
    x_rec = jnp.dot(acts.astype(mm_dtype), params['W_dec'].astype(mm_dtype),
                    preferred_element_type=jnp.float32) + b_dec
    sae_out = x_rec * s + m if cfg.get('input_unit_norm', False) else x_rec
    l2 = jnp.mean((x_rec - xn) ** 2)
    l1 = jnp.mean(jnp.sum(jnp.abs(acts), -1))
    return sae_out, acts, l2, l1


# ----------------------------- main --------------------------------------------
if __name__ == "__main__":
    cfg = CFG
    params = init_params(cfg)

    # Small deterministic test: B=30 with a forced tile of 16 exercises the
    # multi-tile grid, the per-tile stats/col-sum aggregation AND the ragged
    # last block (in-kernel jnp.where mask, no wrapper-side padding copy).
    B = 30
    x = jax.random.normal(jax.random.PRNGKey(0), (B, cfg['act_size']), cfg['dtype'])
    num_batches_not_active = jnp.zeros((cfg['dict_size'],), jnp.float32)

    out, new_nbna = vanilla_sae_forward(x, params, num_batches_not_active, cfg,
                                        batch_tile=16)
    jax.block_until_ready((out, new_nbna))

    # Correctness check against a pure-JAX reference mirroring the bf16 matmul
    # operand choice.  Kernel outputs are bf16 and the row normalization uses
    # the approximate EUP reciprocal, so tolerances are bf16-scale.
    ref_out, ref_acts, ref_l2, ref_l1 = reference_forward(x, params, cfg)
    np.testing.assert_allclose(np.asarray(out['sae_out'].astype(jnp.float32)),
                               np.asarray(ref_out), rtol=2.5e-2, atol=2.5e-2)
    np.testing.assert_allclose(np.asarray(out['feature_acts'].astype(jnp.float32)),
                               np.asarray(ref_acts), rtol=2.5e-2, atol=2.5e-2)
    np.testing.assert_allclose(float(out['l2_loss']), float(ref_l2),
                               rtol=2e-2, atol=1e-3)
    np.testing.assert_allclose(float(out['l1_norm']), float(ref_l1),
                               rtol=2e-2, atol=1e-3)
    assert out['sae_out'].shape == (B, cfg['act_size'])
    assert out['feature_acts'].shape == (B, cfg['dict_size'])
    assert new_nbna.shape == (cfg['dict_size'],)
    assert bool(jnp.isfinite(out['loss']))
    assert bool(jnp.isfinite(out['activation_variance']))

    # TODO(synk): make_decoder_weights_and_grad_unit_norm is a training-time
    # gradient hook (no forward-pass equivalent) and is not implemented here.
    print("KERNEL_OK")
</pallas_src>

<mosaic_0001>
module attributes {stable_mosaic.version = 11 : i64} {
  func.func @_sae_kernel(%arg0: i32, %arg1: memref<16x128xf32, #tpu.memory_space<vmem>>, %arg2: memref<128x256xbf16, #tpu.memory_space<vmem>>, %arg3: memref<1x256xf32, #tpu.memory_space<vmem>>, %arg4: memref<256x128xbf16, #tpu.memory_space<vmem>>, %arg5: memref<1x128xf32, #tpu.memory_space<vmem>>, %arg6: memref<16x128xbf16, #tpu.memory_space<vmem>>, %arg7: memref<16x256xbf16, #tpu.memory_space<vmem>>, %arg8: memref<1x1x256xf32, #tpu.memory_space<vmem>>, %arg9: memref<1x1x128xf32, #tpu.memory_space<vmem>>) attributes {dimension_semantics = [#tpu.dimension_semantics<parallel>], iteration_bounds = array<i64: 2>, scalar_prefetch = 0 : i64, scratch_operands = 0 : i64, tpu.core_type = #tpu.core_type<tc>, window_params = [{transform_indices = @transform_0, window_bounds = array<i64: 16, 128>}, {pipeline_mode = #tpu.pipeline_mode<synchronous>, transform_indices = @transform_1, window_bounds = array<i64: 128, 256>}, {pipeline_mode = #tpu.pipeline_mode<synchronous>, transform_indices = @transform_2, window_bounds = array<i64: 1, 256>}, {pipeline_mode = #tpu.pipeline_mode<synchronous>, transform_indices = @transform_3, window_bounds = array<i64: 256, 128>}, {pipeline_mode = #tpu.pipeline_mode<synchronous>, transform_indices = @transform_4, window_bounds = array<i64: 1, 128>}, {transform_indices = @transform_5, window_bounds = array<i64: 16, 128>}, {transform_indices = @transform_6, window_bounds = array<i64: 16, 256>}, {transform_indices = @transform_7, window_bounds = array<i64: 1, 1, 256>}, {transform_indices = @transform_8, window_bounds = array<i64: 1, 1, 128>}]} {
    %c0 = arith.constant 0 : index
    %c0_0 = arith.constant 0 : index
    %0 = vector.load %arg1[%c0, %c0_0] : memref<16x128xf32, #tpu.memory_space<vmem>>, vector<16x128xf32>
    %cst = arith.constant dense<0.000000e+00> : vector<16xf32>
    %1 = vector.multi_reduction <add>, %0, %cst [1] : vector<16x128xf32> to vector<16xf32>
    %2 = vector.shape_cast %1 : vector<16xf32> to vector<16x1xf32>
    %cst_1 = arith.constant 1.280000e+02 : f32
    %3 = vector.broadcast %cst_1 : f32 to vector<16x1xf32>
    %4 = arith.divf %2, %3 : vector<16x1xf32>
    %5 = vector.broadcast %4 : vector<16x1xf32> to vector<16x128xf32>
    %6 = arith.subf %0, %5 : vector<16x128xf32>
    %7 = arith.mulf %6, %6 : vector<16x128xf32>
    %cst_2 = arith.constant dense<0.000000e+00> : vector<16xf32>
    %8 = vector.multi_reduction <add>, %7, %cst_2 [1] : vector<16x128xf32> to vector<16xf32>
    %9 = vector.shape_cast %8 : vector<16xf32> to vector<16x1xf32>
    %cst_3 = arith.constant 1.270000e+02 : f32
    %10 = vector.broadcast %cst_3 : f32 to vector<16x1xf32>
    %11 = arith.divf %9, %10 : vector<16x1xf32>
    %12 = math.sqrt %11 : vector<16x1xf32>
    %cst_4 = arith.constant 9.99999974E-6 : f32
    %13 = vector.broadcast %cst_4 : f32 to vector<16x1xf32>
    %14 = arith.addf %12, %13 : vector<16x1xf32>
    %15 = tpu.reciprocal %14 {approx = true} : vector<16x1xf32> -> vector<16x1xf32>
    %16 = vector.broadcast %15 : vector<16x1xf32> to vector<16x128xf32>
    %17 = arith.mulf %6, %16 : vector<16x128xf32>
    %c0_5 = arith.constant 0 : index
    %c0_6 = arith.constant 0 : index
    %18 = vector.load %arg5[%c0_5, %c0_6] : memref<1x128xf32, #tpu.memory_space<vmem>>, vector<1x128xf32>
    %c0_7 = arith.constant 0 : index
    %c0_8 = arith.constant 0 : index
    %19 = vector.load %arg3[%c0_7, %c0_8] : memref<1x256xf32, #tpu.memory_space<vmem>>, vector<1x256xf32>
    %20 = vector.broadcast %18 : vector<1x128xf32> to vector<16x128xf32>
    %21 = arith.subf %17, %20 : vector<16x128xf32>
    %22 = arith.truncf %21 : vector<16x128xf32> to vector<16x128xbf16>
    %c0_9 = arith.constant 0 : index
    %c0_10 = arith.constant 0 : index
    %23 = vector.load %arg2[%c0_9, %c0_10] : memref<128x256xbf16, #tpu.memory_space<vmem>>, vector<128x256xbf16>
    %cst_11 = arith.constant dense<0.000000e+00> : vector<16x256xf32>
    %24 = tpu.matmul %22, %23, %cst_11 {dimension_numbers = #tpu.dot_dimension_numbers<[1], [0], [0], [1], [0, 0, 1, 1], [], []>} : vector<16x128xbf16>, vector<128x256xbf16>, vector<16x256xf32> -> vector<16x256xf32>
    %25 = vector.broadcast %19 : vector<1x256xf32> to vector<16x256xf32>
    %26 = arith.addf %24, %25 : vector<16x256xf32>
    %cst_12 = arith.constant 0.000000e+00 : f32
    %27 = vector.broadcast %cst_12 : f32 to vector<16x256xf32>
    %28 = arith.maximumf %26, %27 : vector<16x256xf32>
    %29 = arith.truncf %28 : vector<16x256xf32> to vector<16x256xbf16>
    %c0_13 = arith.constant 0 : index
    %c0_14 = arith.constant 0 : index
    %30 = vector.load %arg4[%c0_13, %c0_14] : memref<256x128xbf16, #tpu.memory_space<vmem>>, vector<256x128xbf16>
    %cst_15 = arith.constant dense<0.000000e+00> : vector<16x128xf32>
    %31 = tpu.matmul %29, %30, %cst_15 {dimension_numbers = #tpu.dot_dimension_numbers<[1], [0], [0], [1], [0, 0, 1, 1], [], []>} : vector<16x256xbf16>, vector<256x128xbf16>, vector<16x128xf32> -> vector<16x128xf32>
    %32 = vector.broadcast %18 : vector<1x128xf32> to vector<16x128xf32>
    %33 = arith.addf %31, %32 : vector<16x128xf32>
    %34 = vector.broadcast %12 : vector<16x1xf32> to vector<16x128xf32>
    %35 = arith.mulf %33, %34 : vector<16x128xf32>
    %36 = vector.broadcast %4 : vector<16x1xf32> to vector<16x128xf32>
    %37 = arith.addf %35, %36 : vector<16x128xf32>
    %38 = arith.truncf %37 : vector<16x128xf32> to vector<16x128xbf16>
    %c0_16 = arith.constant 0 : index
    %c0_17 = arith.constant 0 : index
    %39 = vector.load %arg6[%c0_16, %c0_17] : memref<16x128xbf16, #tpu.memory_space<vmem>>, vector<16x128xbf16>
    tpu.vector_store %arg6[%c0_16, %c0_17], %38 {strides = array<i32>} : memref<16x128xbf16, #tpu.memory_space<vmem>>, vector<16x128xbf16>,
    %40 = arith.truncf %28 : vector<16x256xf32> to vector<16x256xbf16>
    %c0_18 = arith.constant 0 : index
    %c0_19 = arith.constant 0 : index
    %41 = vector.load %arg7[%c0_18, %c0_19] : memref<16x256xbf16, #tpu.memory_space<vmem>>, vector<16x256xbf16>
    tpu.vector_store %arg7[%c0_18, %c0_19], %40 {strides = array<i32>} : memref<16x256xbf16, #tpu.memory_space<vmem>>, vector<16x256xbf16>,
    %c16_i32 = arith.constant 16 : i32
    %42 = arith.muli %arg0, %c16_i32 : i32
    %43 = tpu.iota {dimensions = array<i32: 0>} : vector<16x1xi32>
    %44 = vector.broadcast %42 : i32 to vector<16x1xi32>
    %45 = arith.addi %44, %43 : vector<16x1xi32>
    %c30_i32 = arith.constant 30 : i32
    %46 = vector.broadcast %c30_i32 : i32 to vector<16x1xi32>
    %47 = arith.cmpi slt, %45, %46 : vector<16x1xi32>
    %48 = arith.subf %33, %17 : vector<16x128xf32>
    %49 = arith.mulf %48, %48 : vector<16x128xf32>
    %cst_20 = arith.constant dense<0.000000e+00> : vector<16xf32>
    %50 = vector.multi_reduction <add>, %49, %cst_20 [1] : vector<16x128xf32> to vector<16xf32>
    %51 = vector.shape_cast %50 : vector<16xf32> to vector<16x1xf32>
    %cst_21 = arith.constant 0.000000e+00 : f32
    %52 = vector.broadcast %cst_21 : f32 to vector<16x1xf32>
    %53 = arith.select %47, %51, %52 : vector<16x1xi1>, vector<16x1xf32>
    %cst_22 = arith.constant 0.000000e+00 : f32
    %54 = vector.broadcast %cst_22 : f32 to vector<16x256xf32>
    %55 = arith.cmpf ogt, %28, %54 : vector<16x256xf32>
    %56 = arith.extui %55 : vector<16x256xi1> to vector<16x256xi32>
    %57 = arith.sitofp %56 : vector<16x256xi32> to vector<16x256xf32>
    %cst_23 = arith.constant dense<0.000000e+00> : vector<16xf32>
    %58 = vector.multi_reduction <add>, %57, %cst_23 [1] : vector<16x256xf32> to vector<16xf32>
    %59 = vector.shape_cast %58 : vector<16xf32> to vector<16x1xf32>
    %cst_24 = arith.constant 0.000000e+00 : f32
    %60 = vector.broadcast %cst_24 : f32 to vector<16x1xf32>
    %61 = arith.select %47, %59, %60 : vector<16x1xi1>, vector<16x1xf32>
    %cst_25 = arith.constant 0.00999999977 : f32
    %62 = vector.broadcast %cst_25 : f32 to vector<16x256xf32>
    %63 = arith.cmpf ogt, %28, %62 : vector<16x256xf32>
    %64 = arith.extui %63 : vector<16x256xi1> to vector<16x256xi32>
    %65 = arith.sitofp %64 : vector<16x256xi32> to vector<16x256xf32>
    %cst_26 = arith.constant dense<0.000000e+00> : vector<16xf32>
    %66 = vector.multi_reduction <add>, %65, %cst_26 [1] : vector<16x256xf32> to vector<16xf32>
    %67 = vector.shape_cast %66 : vector<16xf32> to vector<16x1xf32>
    %cst_27 = arith.constant 0.000000e+00 : f32
    %68 = vector.broadcast %cst_27 : f32 to vector<16x1xf32>
    %69 = arith.select %47, %67, %68 : vector<16x1xi1>, vector<16x1xf32>
    %cst_28 = arith.constant 0.000000e+00 : f32
    %70 = vector.shape_cast %47 : vector<16x1xi1> to vector<16x1xi1>
    %71 = vector.broadcast %70 : vector<16x1xi1> to vector<16x256xi1>
    %72 = vector.broadcast %cst_28 : f32 to vector<16x256xf32>
    %73 = arith.select %71, %28, %72 : vector<16x256xi1>, vector<16x256xf32>
    %cst_29 = arith.constant dense<0.000000e+00> : vector<256xf32>
    %74 = vector.multi_reduction <add>, %73, %cst_29 [0] : vector<16x256xf32> to vector<256xf32>
    %75 = vector.shape_cast %74 : vector<256xf32> to vector<1x256xf32>
    %76 = vector.shape_cast %75 : vector<1x256xf32> to vector<1x1x256xf32>
    %c0_30 = arith.constant 0 : index
    %c0_31 = arith.constant 0 : index
    %c0_32 = arith.constant 0 : index
    %77 = vector.load %arg8[%c0_30, %c0_31, %c0_32] : memref<1x1x256xf32, #tpu.memory_space<vmem>>, vector<1x1x256xf32>
    tpu.vector_store %arg8[%c0_30, %c0_31, %c0_32], %76 {strides = array<i32>} : memref<1x1x256xf32, #tpu.memory_space<vmem>>, vector<1x1x256xf32>,
    %78 = tpu.iota {dimensions = array<i32: 2>} : vector<1x1x128xi32>
    %c0_i32 = arith.constant 0 : i32
    %79 = vector.broadcast %c0_i32 : i32 to vector<1x1x128xi32>
    %80 = arith.cmpi eq, %78, %79 : vector<1x1x128xi32>
    %81 = vector.shape_cast %53 : vector<16x1xf32> to vector<1x16x1xf32>
    %cst_33 = arith.constant dense<0.000000e+00> : vector<1xf32>
    %82 = vector.multi_reduction <add>, %81, %cst_33 [1, 2] : vector<1x16x1xf32> to vector<1xf32>
    %83 = vector.shape_cast %82 : vector<1xf32> to vector<1x1x1xf32>
    %84 = vector.extract %83[0, 0, 0] : f32 from vector<1x1x1xf32>
    %cst_34 = arith.constant 0.000000e+00 : f32
    %85 = vector.broadcast %84 : f32 to vector<1x1x128xf32>
    %86 = vector.broadcast %cst_34 : f32 to vector<1x1x128xf32>
    %87 = arith.select %80, %85, %86 : vector<1x1x128xi1>, vector<1x1x128xf32>
    %c1_i32 = arith.constant 1 : i32
    %88 = vector.broadcast %c1_i32 : i32 to vector<1x1x128xi32>
    %89 = arith.cmpi eq, %78, %88 : vector<1x1x128xi32>
    %90 = vector.shape_cast %61 : vector<16x1xf32> to vector<1x16x1xf32>
    %cst_35 = arith.constant dense<0.000000e+00> : vector<1xf32>
    %91 = vector.multi_reduction <add>, %90, %cst_35 [1, 2] : vector<1x16x1xf32> to vector<1xf32>
    %92 = vector.shape_cast %91 : vector<1xf32> to vector<1x1x1xf32>
    %93 = vector.extract %92[0, 0, 0] : f32 from vector<1x1x1xf32>
    %cst_36 = arith.constant 0.000000e+00 : f32
    %94 = vector.broadcast %93 : f32 to vector<1x1x128xf32>
    %95 = vector.broadcast %cst_36 : f32 to vector<1x1x128xf32>
    %96 = arith.select %89, %94, %95 : vector<1x1x128xi1>, vector<1x1x128xf32>
    %97 = arith.addf %87, %96 : vector<1x1x128xf32>
    %c2_i32 = arith.constant 2 : i32
    %98 = vector.broadcast %c2_i32 : i32 to vector<1x1x128xi32>
    %99 = arith.cmpi eq, %78, %98 : vector<1x1x128xi32>
    %100 = arith.mulf %61, %61 : vector<16x1xf32>
    %101 = vector.shape_cast %100 : vector<16x1xf32> to vector<1x16x1xf32>
    %cst_37 = arith.constant dense<0.000000e+00> : vector<1xf32>
    %102 = vector.multi_reduction <add>, %101, %cst_37 [1, 2] : vector<1x16x1xf32> to vector<1xf32>
    %103 = vector.shape_cast %102 : vector<1xf32> to vector<1x1x1xf32>
    %104 = vector.extract %103[0, 0, 0] : f32 from vector<1x1x1xf32>
    %cst_38 = arith.constant 0.000000e+00 : f32
    %105 = vector.broadcast %104 : f32 to vector<1x1x128xf32>
    %106 = vector.broadcast %cst_38 : f32 to vector<1x1x128xf32>
    %107 = arith.select %99, %105, %106 : vector<1x1x128xi1>, vector<1x1x128xf32>
    %108 = arith.addf %97, %107 : vector<1x1x128xf32>
    %c3_i32 = arith.constant 3 : i32
    %109 = vector.broadcast %c3_i32 : i32 to vector<1x1x128xi32>
    %110 = arith.cmpi eq, %78, %109 : vector<1x1x128xi32>
    %111 = vector.shape_cast %69 : vector<16x1xf32> to vector<1x16x1xf32>
    %cst_39 = arith.constant dense<0.000000e+00> : vector<1xf32>
    %112 = vector.multi_reduction <add>, %111, %cst_39 [1, 2] : vector<1x16x1xf32> to vector<1xf32>
    %113 = vector.shape_cast %112 : vector<1xf32> to vector<1x1x1xf32>
    %114 = vector.extract %113[0, 0, 0] : f32 from vector<1x1x1xf32>
    %cst_40 = arith.constant 0.000000e+00 : f32
    %115 = vector.broadcast %114 : f32 to vector<1x1x128xf32>
    %116 = vector.broadcast %cst_40 : f32 to vector<1x1x128xf32>
    %117 = arith.select %110, %115, %116 : vector<1x1x128xi1>, vector<1x1x128xf32>
    %118 = arith.addf %108, %117 : vector<1x1x128xf32>
    %c0_41 = arith.constant 0 : index
    %c0_42 = arith.constant 0 : index
    %c0_43 = arith.constant 0 : index
    %119 = vector.load %arg9[%c0_41, %c0_42, %c0_43] : memref<1x1x128xf32, #tpu.memory_space<vmem>>, vector<1x1x128xf32>
    tpu.vector_store %arg9[%c0_41, %c0_42, %c0_43], %118 {strides = array<i32>} : memref<1x1x128xf32, #tpu.memory_space<vmem>>, vector<1x1x128xf32>,
    return
  }
  func.func @transform_0(%arg0: i32) -> (i32, i32) {
    %c0_i32 = arith.constant 0 : i32
    %c0_i32_0 = arith.constant 0 : i32
    return %arg0, %c0_i32 : i32, i32
  }
  func.func @transform_1(%arg0: i32) -> (i32, i32) {
    %c0_i32 = arith.constant 0 : i32
    %c0_i32_0 = arith.constant 0 : i32
    %c0_i32_1 = arith.constant 0 : i32
    return %c0_i32, %c0_i32_0 : i32, i32
  }
  func.func @transform_2(%arg0: i32) -> (i32, i32) {
    %c0_i32 = arith.constant 0 : i32
    %c0_i32_0 = arith.constant 0 : i32
    %c0_i32_1 = arith.constant 0 : i32
    return %c0_i32, %c0_i32_0 : i32, i32
  }
  func.func @transform_3(%arg0: i32) -> (i32, i32) {
    %c0_i32 = arith.constant 0 : i32
    %c0_i32_0 = arith.constant 0 : i32
    %c0_i32_1 = arith.constant 0 : i32
    return %c0_i32, %c0_i32_0 : i32, i32
  }
  func.func @transform_4(%arg0: i32) -> (i32, i32) {
    %c0_i32 = arith.constant 0 : i32
    %c0_i32_0 = arith.constant 0 : i32
    %c0_i32_1 = arith.constant 0 : i32
    return %c0_i32, %c0_i32_0 : i32, i32
  }
  func.func @transform_5(%arg0: i32) -> (i32, i32) {
    %c0_i32 = arith.constant 0 : i32
    %c0_i32_0 = arith.constant 0 : i32
    return %arg0, %c0_i32 : i32, i32
  }
  func.func @transform_6(%arg0: i32) -> (i32, i32) {
    %c0_i32 = arith.constant 0 : i32
    %c0_i32_0 = arith.constant 0 : i32
    return %arg0, %c0_i32 : i32, i32
  }
  func.func @transform_7(%arg0: i32) -> (i32, i32, i32) {
    %c0_i32 = arith.constant 0 : i32
    %c0_i32_0 = arith.constant 0 : i32
    %c0_i32_1 = arith.constant 0 : i32
    return %arg0, %c0_i32, %c0_i32_0 : i32, i32, i32
  }
  func.func @transform_8(%arg0: i32) -> (i32, i32, i32) {
    %c0_i32 = arith.constant 0 : i32
    %c0_i32_0 = arith.constant 0 : i32
    %c0_i32_1 = arith.constant 0 : i32
    return %arg0, %c0_i32, %c0_i32_0 : i32, i32, i32
  }
}

module attributes {stable_mosaic.version = 11 : i64} {
  func.func @_sae_kernel(%arg0: i32, %arg1: memref<16x128xf32, #tpu.memory_space<vmem>>, %arg2: memref<128x256xbf16, #tpu.memory_space<vmem>>, %arg3: memref<1x256xf32, #tpu.memory_space<vmem>>, %arg4: memref<256x128xbf16, #tpu.memory_space<vmem>>, %arg5: memref<1x128xf32, #tpu.memory_space<vmem>>, %arg6: memref<16x128xbf16, #tpu.memory_space<vmem>>, %arg7: memref<16x256xbf16, #tpu.memory_space<vmem>>, %arg8: memref<1x1x256xf32, #tpu.memory_space<vmem>>, %arg9: memref<1x1x128xf32, #tpu.memory_space<vmem>>) attributes {dimension_semantics = [#tpu.dimension_semantics<parallel>], iteration_bounds = array<i64: 2>, scalar_prefetch = 0 : i64, scratch_operands = 0 : i64, tpu.core_type = #tpu.core_type<tc>, window_params = [{transform_indices = @transform_0, window_bounds = array<i64: 16, 128>}, {pipeline_mode = #tpu.pipeline_mode<synchronous>, transform_indices = @transform_1, window_bounds = array<i64: 128, 256>}, {pipeline_mode = #tpu.pipeline_mode<synchronous>, transform_indices = @transform_2, window_bounds = array<i64: 1, 256>}, {pipeline_mode = #tpu.pipeline_mode<synchronous>, transform_indices = @transform_3, window_bounds = array<i64: 256, 128>}, {pipeline_mode = #tpu.pipeline_mode<synchronous>, transform_indices = @transform_4, window_bounds = array<i64: 1, 128>}, {transform_indices = @transform_5, window_bounds = array<i64: 16, 128>}, {transform_indices = @transform_6, window_bounds = array<i64: 16, 256>}, {transform_indices = @transform_7, window_bounds = array<i64: 1, 1, 256>}, {transform_indices = @transform_8, window_bounds = array<i64: 1, 1, 128>}]} {
    %c0 = arith.constant 0 : index
    %c0_0 = arith.constant 0 : index
    %0 = vector.load %arg1[%c0, %c0_0] : memref<16x128xf32, #tpu.memory_space<vmem>>, vector<16x128xf32>
    %cst = arith.constant dense<0.000000e+00> : vector<16xf32>
    %1 = vector.multi_reduction <add>, %0, %cst [1] : vector<16x128xf32> to vector<16xf32>
    %2 = vector.shape_cast %1 : vector<16xf32> to vector<16x1xf32>
    %cst_1 = arith.constant 1.280000e+02 : f32
    %3 = vector.broadcast %cst_1 : f32 to vector<16x1xf32>
    %4 = arith.divf %2, %3 : vector<16x1xf32>
    %5 = vector.broadcast %4 : vector<16x1xf32> to vector<16x128xf32>
    %6 = arith.subf %0, %5 : vector<16x128xf32>
    %7 = arith.mulf %6, %6 : vector<16x128xf32>
    %cst_2 = arith.constant dense<0.000000e+00> : vector<16xf32>
    %8 = vector.multi_reduction <add>, %7, %cst_2 [1] : vector<16x128xf32> to vector<16xf32>
    %9 = vector.shape_cast %8 : vector<16xf32> to vector<16x1xf32>
    %cst_3 = arith.constant 1.270000e+02 : f32
    %10 = vector.broadcast %cst_3 : f32 to vector<16x1xf32>
    %11 = arith.divf %9, %10 : vector<16x1xf32>
    %12 = math.sqrt %11 : vector<16x1xf32>
    %cst_4 = arith.constant 9.99999974E-6 : f32
    %13 = vector.broadcast %cst_4 : f32 to vector<16x1xf32>
    %14 = arith.addf %12, %13 : vector<16x1xf32>
    %15 = tpu.reciprocal %14 {approx = true} : vector<16x1xf32> -> vector<16x1xf32>
    %16 = vector.broadcast %15 : vector<16x1xf32> to vector<16x128xf32>
    %17 = arith.mulf %6, %16 : vector<16x128xf32>
    %c0_5 = arith.constant 0 : index
    %c0_6 = arith.constant 0 : index
    %18 = vector.load %arg5[%c0_5, %c0_6] : memref<1x128xf32, #tpu.memory_space<vmem>>, vector<1x128xf32>
    %c0_7 = arith.constant 0 : index
    %c0_8 = arith.constant 0 : index
    %19 = vector.load %arg3[%c0_7, %c0_8] : memref<1x256xf32, #tpu.memory_space<vmem>>, vector<1x256xf32>
    %20 = vector.broadcast %18 : vector<1x128xf32> to vector<16x128xf32>
    %21 = arith.subf %17, %20 : vector<16x128xf32>
    %22 = arith.truncf %21 : vector<16x128xf32> to vector<16x128xbf16>
    %c0_9 = arith.constant 0 : index
    %c0_10 = arith.constant 0 : index
    %23 = vector.load %arg2[%c0_9, %c0_10] : memref<128x256xbf16, #tpu.memory_space<vmem>>, vector<128x256xbf16>
    %cst_11 = arith.constant dense<0.000000e+00> : vector<16x256xf32>
    %24 = tpu.matmul %22, %23, %cst_11 {dimension_numbers = #tpu.dot_dimension_numbers<[1], [0], [0], [1], [0, 0, 1, 1], [], []>} : vector<16x128xbf16>, vector<128x256xbf16>, vector<16x256xf32> -> vector<16x256xf32>
    %25 = vector.broadcast %19 : vector<1x256xf32> to vector<16x256xf32>
    %26 = arith.addf %24, %25 : vector<16x256xf32>
    %cst_12 = arith.constant 0.000000e+00 : f32
    %27 = vector.broadcast %cst_12 : f32 to vector<16x256xf32>
    %28 = arith.maximumf %26, %27 : vector<16x256xf32>
    %29 = arith.truncf %28 : vector<16x256xf32> to vector<16x256xbf16>
    %c0_13 = arith.constant 0 : index
    %c0_14 = arith.constant 0 : index
    %30 = vector.load %arg4[%c0_13, %c0_14] : memref<256x128xbf16, #tpu.memory_space<vmem>>, vector<256x128xbf16>
    %cst_15 = arith.constant dense<0.000000e+00> : vector<16x128xf32>
    %31 = tpu.matmul %29, %30, %cst_15 {dimension_numbers = #tpu.dot_dimension_numbers<[1], [0], [0], [1], [0, 0, 1, 1], [], []>} : vector<16x256xbf16>, vector<256x128xbf16>, vector<16x128xf32> -> vector<16x128xf32>
    %32 = vector.broadcast %18 : vector<1x128xf32> to vector<16x128xf32>
    %33 = arith.addf %31, %32 : vector<16x128xf32>
    %34 = vector.broadcast %12 : vector<16x1xf32> to vector<16x128xf32>
    %35 = arith.mulf %33, %34 : vector<16x128xf32>
    %36 = vector.broadcast %4 : vector<16x1xf32> to vector<16x128xf32>
    %37 = arith.addf %35, %36 : vector<16x128xf32>
    %38 = arith.truncf %37 : vector<16x128xf32> to vector<16x128xbf16>
    %c0_16 = arith.constant 0 : index
    %c0_17 = arith.constant 0 : index
    %39 = vector.load %arg6[%c0_16, %c0_17] : memref<16x128xbf16, #tpu.memory_space<vmem>>, vector<16x128xbf16>
    tpu.vector_store %arg6[%c0_16, %c0_17], %38 {strides = array<i32>} : memref<16x128xbf16, #tpu.memory_space<vmem>>, vector<16x128xbf16>,
    %40 = arith.truncf %28 : vector<16x256xf32> to vector<16x256xbf16>
    %c0_18 = arith.constant 0 : index
    %c0_19 = arith.constant 0 : index
    %41 = vector.load %arg7[%c0_18, %c0_19] : memref<16x256xbf16, #tpu.memory_space<vmem>>, vector<16x256xbf16>
    tpu.vector_store %arg7[%c0_18, %c0_19], %40 {strides = array<i32>} : memref<16x256xbf16, #tpu.memory_space<vmem>>, vector<16x256xbf16>,
    %c16_i32 = arith.constant 16 : i32
    %42 = arith.muli %arg0, %c16_i32 : i32
    %43 = tpu.iota {dimensions = array<i32: 0>} : vector<16x1xi32>
    %44 = vector.broadcast %42 : i32 to vector<16x1xi32>
    %45 = arith.addi %44, %43 : vector<16x1xi32>
    %c30_i32 = arith.constant 30 : i32
    %46 = vector.broadcast %c30_i32 : i32 to vector<16x1xi32>
    %47 = arith.cmpi slt, %45, %46 : vector<16x1xi32>
    %48 = arith.subf %33, %17 : vector<16x128xf32>
    %49 = arith.mulf %48, %48 : vector<16x128xf32>
    %cst_20 = arith.constant dense<0.000000e+00> : vector<16xf32>
    %50 = vector.multi_reduction <add>, %49, %cst_20 [1] : vector<16x128xf32> to vector<16xf32>
    %51 = vector.shape_cast %50 : vector<16xf32> to vector<16x1xf32>
    %cst_21 = arith.constant 0.000000e+00 : f32
    %52 = vector.broadcast %cst_21 : f32 to vector<16x1xf32>
    %53 = arith.select %47, %51, %52 : vector<16x1xi1>, vector<16x1xf32>
    %cst_22 = arith.constant 0.000000e+00 : f32
    %54 = vector.broadcast %cst_22 : f32 to vector<16x256xf32>
    %55 = arith.cmpf ogt, %28, %54 : vector<16x256xf32>
    %56 = arith.extui %55 : vector<16x256xi1> to vector<16x256xi32>
    %57 = arith.sitofp %56 : vector<16x256xi32> to vector<16x256xf32>
    %cst_23 = arith.constant dense<0.000000e+00> : vector<16xf32>
    %58 = vector.multi_reduction <add>, %57, %cst_23 [1] : vector<16x256xf32> to vector<16xf32>
    %59 = vector.shape_cast %58 : vector<16xf32> to vector<16x1xf32>
    %cst_24 = arith.constant 0.000000e+00 : f32
    %60 = vector.broadcast %cst_24 : f32 to vector<16x1xf32>
    %61 = arith.select %47, %59, %60 : vector<16x1xi1>, vector<16x1xf32>
    %cst_25 = arith.constant 0.00999999977 : f32
    %62 = vector.broadcast %cst_25 : f32 to vector<16x256xf32>
    %63 = arith.cmpf ogt, %28, %62 : vector<16x256xf32>
    %64 = arith.extui %63 : vector<16x256xi1> to vector<16x256xi32>
    %65 = arith.sitofp %64 : vector<16x256xi32> to vector<16x256xf32>
    %cst_26 = arith.constant dense<0.000000e+00> : vector<16xf32>
    %66 = vector.multi_reduction <add>, %65, %cst_26 [1] : vector<16x256xf32> to vector<16xf32>
    %67 = vector.shape_cast %66 : vector<16xf32> to vector<16x1xf32>
    %cst_27 = arith.constant 0.000000e+00 : f32
    %68 = vector.broadcast %cst_27 : f32 to vector<16x1xf32>
    %69 = arith.select %47, %67, %68 : vector<16x1xi1>, vector<16x1xf32>
    %cst_28 = arith.constant 0.000000e+00 : f32
    %70 = vector.shape_cast %47 : vector<16x1xi1> to vector<16x1xi1>
    %71 = vector.broadcast %70 : vector<16x1xi1> to vector<16x256xi1>
    %72 = vector.broadcast %cst_28 : f32 to vector<16x256xf32>
    %73 = arith.select %71, %28, %72 : vector<16x256xi1>, vector<16x256xf32>
    %cst_29 = arith.constant dense<0.000000e+00> : vector<256xf32>
    %74 = vector.multi_reduction <add>, %73, %cst_29 [0] : vector<16x256xf32> to vector<256xf32>
    %75 = vector.shape_cast %74 : vector<256xf32> to vector<1x256xf32>
    %76 = vector.shape_cast %75 : vector<1x256xf32> to vector<1x1x256xf32>
    %c0_30 = arith.constant 0 : index
    %c0_31 = arith.constant 0 : index
    %c0_32 = arith.constant 0 : index
    %77 = vector.load %arg8[%c0_30, %c0_31, %c0_32] : memref<1x1x256xf32, #tpu.memory_space<vmem>>, vector<1x1x256xf32>
    tpu.vector_store %arg8[%c0_30, %c0_31, %c0_32], %76 {strides = array<i32>} : memref<1x1x256xf32, #tpu.memory_space<vmem>>, vector<1x1x256xf32>,
    %78 = tpu.iota {dimensions = array<i32: 2>} : vector<1x1x128xi32>
    %c0_i32 = arith.constant 0 : i32
    %79 = vector.broadcast %c0_i32 : i32 to vector<1x1x128xi32>
    %80 = arith.cmpi eq, %78, %79 : vector<1x1x128xi32>
    %81 = vector.shape_cast %53 : vector<16x1xf32> to vector<1x16x1xf32>
    %cst_33 = arith.constant dense<0.000000e+00> : vector<1xf32>
    %82 = vector.multi_reduction <add>, %81, %cst_33 [1, 2] : vector<1x16x1xf32> to vector<1xf32>
    %83 = vector.shape_cast %82 : vector<1xf32> to vector<1x1x1xf32>
    %84 = vector.extract %83[0, 0, 0] : f32 from vector<1x1x1xf32>
    %cst_34 = arith.constant 0.000000e+00 : f32
    %85 = vector.broadcast %84 : f32 to vector<1x1x128xf32>
    %86 = vector.broadcast %cst_34 : f32 to vector<1x1x128xf32>
    %87 = arith.select %80, %85, %86 : vector<1x1x128xi1>, vector<1x1x128xf32>
    %c1_i32 = arith.constant 1 : i32
    %88 = vector.broadcast %c1_i32 : i32 to vector<1x1x128xi32>
    %89 = arith.cmpi eq, %78, %88 : vector<1x1x128xi32>
    %90 = vector.shape_cast %61 : vector<16x1xf32> to vector<1x16x1xf32>
    %cst_35 = arith.constant dense<0.000000e+00> : vector<1xf32>
    %91 = vector.multi_reduction <add>, %90, %cst_35 [1, 2] : vector<1x16x1xf32> to vector<1xf32>
    %92 = vector.shape_cast %91 : vector<1xf32> to vector<1x1x1xf32>
    %93 = vector.extract %92[0, 0, 0] : f32 from vector<1x1x1xf32>
    %cst_36 = arith.constant 0.000000e+00 : f32
    %94 = vector.broadcast %93 : f32 to vector<1x1x128xf32>
    %95 = vector.broadcast %cst_36 : f32 to vector<1x1x128xf32>
    %96 = arith.select %89, %94, %95 : vector<1x1x128xi1>, vector<1x1x128xf32>
    %97 = arith.addf %87, %96 : vector<1x1x128xf32>
    %c2_i32 = arith.constant 2 : i32
    %98 = vector.broadcast %c2_i32 : i32 to vector<1x1x128xi32>
    %99 = arith.cmpi eq, %78, %98 : vector<1x1x128xi32>
    %100 = arith.mulf %61, %61 : vector<16x1xf32>
    %101 = vector.shape_cast %100 : vector<16x1xf32> to vector<1x16x1xf32>
    %cst_37 = arith.constant dense<0.000000e+00> : vector<1xf32>
    %102 = vector.multi_reduction <add>, %101, %cst_37 [1, 2] : vector<1x16x1xf32> to vector<1xf32>
    %103 = vector.shape_cast %102 : vector<1xf32> to vector<1x1x1xf32>
    %104 = vector.extract %103[0, 0, 0] : f32 from vector<1x1x1xf32>
    %cst_38 = arith.constant 0.000000e+00 : f32
    %105 = vector.broadcast %104 : f32 to vector<1x1x128xf32>
    %106 = vector.broadcast %cst_38 : f32 to vector<1x1x128xf32>
    %107 = arith.select %99, %105, %106 : vector<1x1x128xi1>, vector<1x1x128xf32>
    %108 = arith.addf %97, %107 : vector<1x1x128xf32>
    %c3_i32 = arith.constant 3 : i32
    %109 = vector.broadcast %c3_i32 : i32 to vector<1x1x128xi32>
    %110 = arith.cmpi eq, %78, %109 : vector<1x1x128xi32>
    %111 = vector.shape_cast %69 : vector<16x1xf32> to vector<1x16x1xf32>
    %cst_39 = arith.constant dense<0.000000e+00> : vector<1xf32>
    %112 = vector.multi_reduction <add>, %111, %cst_39 [1, 2] : vector<1x16x1xf32> to vector<1xf32>
    %113 = vector.shape_cast %112 : vector<1xf32> to vector<1x1x1xf32>
    %114 = vector.extract %113[0, 0, 0] : f32 from vector<1x1x1xf32>
    %cst_40 = arith.constant 0.000000e+00 : f32
    %115 = vector.broadcast %114 : f32 to vector<1x1x128xf32>
    %116 = vector.broadcast %cst_40 : f32 to vector<1x1x128xf32>
    %117 = arith.select %110, %115, %116 : vector<1x1x128xi1>, vector<1x1x128xf32>
    %118 = arith.addf %108, %117 : vector<1x1x128xf32>
    %c0_41 = arith.constant 0 : index
    %c0_42 = arith.constant 0 : index
    %c0_43 = arith.constant 0 : index
    %119 = vector.load %arg9[%c0_41, %c0_42, %c0_43] : memref<1x1x128xf32, #tpu.memory_space<vmem>>, vector<1x1x128xf32>
    tpu.vector_store %arg9[%c0_41, %c0_42, %c0_43], %118 {strides = array<i32>} : memref<1x1x128xf32, #tpu.memory_space<vmem>>, vector<1x1x128xf32>,
    return
  }
  func.func @transform_0(%arg0: i32) -> (i32, i32) {
    %c0_i32 = arith.constant 0 : i32
    %c0_i32_0 = arith.constant 0 : i32
    return %arg0, %c0_i32 : i32, i32
  }
  func.func @transform_1(%arg0: i32) -> (i32, i32) {
    %c0_i32 = arith.constant 0 : i32
    %c0_i32_0 = arith.constant 0 : i32
    %c0_i32_1 = arith.constant 0 : i32
    return %c0_i32, %c0_i32_0 : i32, i32
  }
  func.func @transform_2(%arg0: i32) -> (i32, i32) {
    %c0_i32 = arith.constant 0 : i32
    %c0_i32_0 = arith.constant 0 : i32
    %c0_i32_1 = arith.constant 0 : i32
    return %c0_i32, %c0_i32_0 : i32, i32
  }
  func.func @transform_3(%arg0: i32) -> (i32, i32) {
    %c0_i32 = arith.constant 0 : i32
    %c0_i32_0 = arith.constant 0 : i32
    %c0_i32_1 = arith.constant 0 : i32
    return %c0_i32, %c0_i32_0 : i32, i32
  }
  func.func @transform_4(%arg0: i32) -> (i32, i32) {
    %c0_i32 = arith.constant 0 : i32
    %c0_i32_0 = arith.constant 0 : i32
    %c0_i32_1 = arith.constant 0 : i32
    return %c0_i32, %c0_i32_0 : i32, i32
  }
  func.func @transform_5(%arg0: i32) -> (i32, i32) {
    %c0_i32 = arith.constant 0 : i32
    %c0_i32_0 = arith.constant 0 : i32
    return %arg0, %c0_i32 : i32, i32
  }
  func.func @transform_6(%arg0: i32) -> (i32, i32) {
    %c0_i32 = arith.constant 0 : i32
    %c0_i32_0 = arith.constant 0 : i32
    return %arg0, %c0_i32 : i32, i32
  }
  func.func @transform_7(%arg0: i32) -> (i32, i32, i32) {
    %c0_i32 = arith.constant 0 : i32
    %c0_i32_0 = arith.constant 0 : i32
    %c0_i32_1 = arith.constant 0 : i32
    return %arg0, %c0_i32, %c0_i32_0 : i32, i32, i32
  }
  func.func @transform_8(%arg0: i32) -> (i32, i32, i32) {
    %c0_i32 = arith.constant 0 : i32
    %c0_i32_0 = arith.constant 0 : i32
    %c0_i32_1 = arith.constant 0 : i32
    return %arg0, %c0_i32, %c0_i32_0 : i32, i32, i32
  }
}

</mosaic_0001>

<bundles_post_ra>
// kernel: tpu_custom_call.1
= control target key start
LH: loop header
LB: loop body
LE: loop exit
PB: predicated region body
PF: predicated region fallthrough
CT: control target
= control target key end

     0   :  { %s2214_s0 = inlined_call_operand.hbm [shape: f32[30,128], index: 0, kind: input, shape index: {}]   ;;  %s2215_s1 = inlined_call_operand.hbm [shape: bf16[128,256], index: 1, kind: input, shape index: {}]   ;;  %s2216_s2 = inlined_call_operand.hbm [shape: f32[1,256], index: 2, kind: input, shape index: {}]   ;;  %s2217_s3 = inlined_call_operand.hbm [shape: bf16[256,128], index: 3, kind: input, shape index: {}]   ;;  %s2218_s4 = inlined_call_operand.vmem [shape: f32[1,128], index: 4, kind: input, shape index: {}]   ;;  %s2219_s5 = inlined_call_operand.hbm [shape: bf16[30,128], index: 5, kind: output, shape index: {0}]   ;;  %s2220_s6 = inlined_call_operand.hbm [shape: bf16[30,256], index: 6, kind: output, shape index: {1}]   ;;  %s2221_s7 = inlined_call_operand.hbm [shape: f32[2,1,256], index: 7, kind: output, shape index: {2}]   ;;  %s2222_s8 = inlined_call_operand.hbm [shape: f32[2,1,128], index: 8, kind: output, shape index: {3}]  }
   0x1   :  { %2226 = sst [smem:[#allocation22_spill]] %s2214_s0 }
   0x2   :  { %2227 = sst [smem:[#allocation23_spill]] %s2215_s1 }
   0x3   :  { %2228 = sst [smem:[#allocation24_spill]] %s2216_s2 }
   0x4   :  { %2229 = sst [smem:[#allocation25_spill]] %s2217_s3 }
   0x5   :  { %2230 = sst [smem:[#allocation26_spill]] %s2218_s4 }
   0x6   :  { %2231 = sst [smem:[#allocation27_spill]] %s2220_s6 }
   0x7   :  { %14 = vsyncpa [#allocation3], 0 }
   0x8   :  { %16 = vsyncpa [#allocation3 + $0x1], 0 }
   0x9   :  { %17 = vsyncpa [#allocation6], 0 }
   0xa   :  { %18 = vsyncpa [#allocation9], 0 }
   0xb   :  { %19 = vsyncpa [#allocation4], 0 }
   0xc   :  { %21 = vsyncpa [#allocation4 + $0x1], 0 }
   0xd   :  { %22 = vsyncpa [#allocation12], 0 }
   0xe   :  { %24 = vsyncpa [#allocation12 + $0x1], 0 }
   0xf   :  { %25 = vsyncpa [#allocation15], 0 }
  0x10   :  { %27 = vsyncpa [#allocation15 + $0x1], 0  ;;  %s1891_s27 = smov 0   ;;  %s1893_s28 = smov 0  }
  0x11   :  { %s1895_s29 = smov 0   ;;  %s1897_s30 = smov 0  }
  0x12 LB: > { %s1912_s9 = sadd.s32 4294967295, %s1830_s30   ;;  %s2223_s10 = sadd.s32 4294967294, %s1830_s30   ;;  %s1830_s30 = sphi %s1897_s30, %s2251_s30   ;;  %s1826_s29 = sphi %s1895_s29, %s2250_s29   ;;  %s1822_s28 = sphi %s1893_s28, %s2249_s28   ;;  %s1818_s27 = sphi %s1891_s27, %s2248_s27  }
  0x13   : > { %p53_p0 = scmp.ne.s32.totalorder %s1822_s28, %s1818_s27  ;;  %p54_p1 = scmp.eq.s32.totalorder %s1912_s9, 0 }
  0x14   : > { %p161_p2 = scmp.eq.s32.totalorder %s1912_s9, 1  ;;  %p167_p3 = scmp.eq.s32.totalorder %s2223_s10, 1 }
  0x15   : > { %p1923_p4 = por %p54_p1, %p53_p0  ;;  %p1215_p5 = scmp.ge.s32.totalorder %s1830_s30, 1 }
  0x16   : > { %p1928_p6 = por %p167_p3, %p53_p0  ;;  %p252_p7 = scmp.lt.s32.totalorder %s1830_s30, 3 }
  0x17   : > { %s2234_s1 = sld [smem:[#allocation23_spill]]  ;;  %s1832_s17 = smov [#allocation5]  }
  0x18   : > { %p1936_p8 = pnand %p1215_p5, %p252_p7  ;;  %s265_s18 = sshll.u32 %s1832_s17, 4  ;;  %s266_s18 = int_to_ptr.vmem [resolvable:$true] %s265_s18 }
  0x19   : > { %s2237_s2 = sld [smem:[#allocation24_spill]]  ;;  %s2224_s23 = smov 128  }
  0x1a   : > { %p1450_p9 = pneg %p1936_p8  ;;  %s2225_s24 = smov 8  }
  0x1b   : > { %s1835_s25 = smov [#allocation7]   ;;  %s2238_s3 = sld [smem:[#allocation25_spill]] }
  0x1c   : > { %p1944_p10 = pnand %p1450_p9, %p54_p1  ;;  %s280_s26 = sshll.u32 %s1835_s25, 4  ;;  %s281_s26 = int_to_ptr.vmem [resolvable:$true] %s280_s26 }
  0x1d   : > { %s263_s15 = sshll.u32 %s2234_s1, 4  ;;  %s1836_s20 = smov [#allocation8]   ;;  %s264_s15 = int_to_ptr.hbm [resolvable:$true] %s263_s15 }
  0x1e   : > { %1453 = dma.hbm_to_vmem [thread:$0]  (!%p1944_p10), %s264_s15, 2048, %s266_s18, [#allocation6], %s2224_s23, %s2224_s23, %s2225_s24  }
  0x1f   : > { %s278_s22 = sshll.u32 %s2237_s2, 4  ;;  %s291_s15 = sshll.u32 %s1836_s20, 4  ;;  %s279_s22 = int_to_ptr.hbm [resolvable:$true] %s278_s22  ;;  %s292_s15 = int_to_ptr.vmem [resolvable:$true] %s291_s15 }
  0x20   : > { %1456 = dma.hbm_to_vmem [thread:$0]  (!%p1944_p10), %s279_s22, 32, %s281_s26, [#allocation6]  }
  0x21   : > { %s289_s17 = sshll.u32 %s2238_s3, 4  ;;  %s1837_s18 = smov 64   ;;  %s290_s17 = int_to_ptr.hbm [resolvable:$true] %s289_s17 }
  0x22   : > { %s1838_s21 = smov 4   ;;  %s1965_s25 = sadd.s32 1, %s1830_s30  }
  0x23   : > { %1459 = dma.hbm_to_vmem [thread:$0]  (!%p1944_p10), %s290_s17, 2048, %s292_s15, [#allocation9], %s1837_s18, %s1837_s18, %s1838_s21  }
  0x24   : > { %s37_s13 = ssub.s32 %s1830_s30, %s1965_s25  ;;  %s40_s14 = sadd.s32 1, %s1826_s29 }
  0x25   : > { %p38_p12 = scmp.eq.s32.totalorder %s37_s13, 0  ;;  %p47_p13 = scmp.ne.s32.totalorder %s1826_s29, %s1822_s28 }
  0x26   : > { %p48_p0 = scmp.eq.s32.totalorder %s1830_s30, 0  ;;  %p1480_p5 = scmp.lt.s32.totalorder %s1830_s30, 2 }
  0x27   : > { %s1974_s10 = scalar_select %p38_p12, %s1826_s29, %s40_s14  }
  0x28   : > { %p1978_p3 = por %p161_p2, %p47_p13  ;;  %s308_s26 = sand.u32 1, %s1826_s29  }
  0x29   : > { %s1379_s20 = sshll.u32 %s1830_s30, 4  ;;  %p49_p7 = por %p48_p0, %p47_p13 }
  0x2a   : > { %s1220_s19 = sshll.u32 %s308_s26, 4  ;;  %s2240_s0 = sld [smem:[#allocation22_spill]] }
  0x2b   : > { %s312_s13 = scalar_lea.vmem [#allocation2], %s1220_s19  ;;  %p1988_p9 = pnand %p1480_p5, %p49_p7 }
  0x2c   : > { %s320_s23 = sshll.u32 %s312_s13, 4  ;;  %s309_s24 = scalar_lea.sflag [#allocation3], %s308_s26  ;;  %s321_s23 = int_to_ptr.vmem [resolvable:$true] %s320_s23 }
  0x2d   : > { %p1638_p10 = pneg %p1988_p9 }
  0x30   : > { %s317_s18 = scalar_lea.hbm %s2240_s0, %s1379_s20  ;;  %s1641_s19 = scalar_lea.hbm %s2240_s0, 32 }
  0x31   : > { %s318_s21 = sshll.u32 %s317_s18, 4  ;;  %s319_s21 = int_to_ptr.hbm [resolvable:$true] %s318_s21 }
  0x32   : > { %s1634_s1 = sshra.s32 %s319_s21, 4  ;;  %s1635_s1 = int_to_ptr.hbm [resolvable:$true] %s1634_s1 }
  0x33   : > { %s1636_s2 = scalar_lea.hbm %s1635_s1, 16  ;;  %p1642_p0 = scmp.lt.s32.totalorder %s1635_s1, %s2240_s0 }
  0x34   : > { %p1637_p2 = scmp.ne.s32.totalorder %s1635_s1, %s1636_s2  ;;  %p1643_p5 = scmp.lt.s32.totalorder %s1641_s19, %s1636_s2 }
  0x36   : > { %p1639_p12 = pnand %p1638_p10, %p1637_p2  ;;  %p1644_p7 = por %p1643_p5, %p1642_p0 }
  0x38   : > { %p1640_p13 = pneg %p1639_p12 }
  0x3a   : > { %p1645_p11 = pnand %p1644_p7, %p1640_p13 }
  0x3c   : > { %1648 = shalt.err (!%p1645_p11)
}
  0x3d   : > { %s2242_s26 = smov 8   ;;  %s2243_s13 = smov 128  }
  0x3e   : > { %1463 = dma.hbm_to_vmem [thread:$0]  (!%p1988_p9), %s319_s21, 256, %s321_s23, %s309_s24, %s2243_s13, %s2243_s13, %s2242_s26  }
  0x3f   : > { %332 = sbr.rel (%p1936_p8) target bundleno = 965 (0x3c5), region = 40  ;;  %s2008_s20 = sand.u32 (!%p1936_p8), 1, %s1822_s28  }
  0x40   : > { %s1224_s1 = sshll.u32 (!%p1936_p8), %s2008_s20, 4  ;;  %s335_s2 = scalar_lea.sflag (!%p1936_p8), [#allocation3], %s2008_s20 }
  0x41   : > { %s338_s17 = scalar_lea.vmem (!%p1936_p8), [#allocation2], %s1224_s1 }
  0x44   : > { %1793 = dma.done.wait (%p1923_p4), %s335_s2, 256  }
  0x45   : > { %1795 = vsyncadd (%p1923_p4), %s335_s2, 4294967040 }
  0x46   : > { %1797 = dma.done.wait (%p54_p1), [#allocation6], 2080  }
  0x47   : > { %1799 = vsyncadd (%p54_p1), [#allocation6], 4294965216 }
  0x48   : > { %1801 = dma.done.wait (%p54_p1), [#allocation9], 2048  }
  0x49   : > { %1803 = vsyncadd (%p54_p1), [#allocation9], 4294965248  ;;  %v404_v0 = vld [vmem:[%s338_s17] sm:$0xff]  ;;  %v405_v1 = vld [vmem:[%s338_s17 + $0x8] sm:$0xff]  ;;  %v1839_v2 = vmov 128.0   ;;  %v1840_v17 = vmov 127.0  }
  0x4a   : > { %406 = vadd.xlane.f32.xlu0 %v404_v0  ;;  %1532 = vrcp.f32 %v1839_v2  ;;  %v1289_v20 = vld [vmem:[#allocation5 + $0x70] sm:$0xf]  ;;  %v1395_v21 = vld [vmem:[#allocation5 + $0x74] sm:$0xf0]  ;;  %v1394_v22 = vld [vmem:[#allocation5 + $0x74] sm:$0xf] }
  0x4b   : > { %1534 = vrcp.f32 %v1840_v17  ;;  %v1290_v23 = vor.u32 %v1395_v21, %v1289_v20  ;;  %v1291_v24 = vld [vmem:[#allocation5 + $0x78] sm:$0xf0]  ;;  %v1281_v27 = vld [vmem:[#allocation5 + $0x60] sm:$0xf]  ;;  %v1393_v28 = vld [vmem:[#allocation5 + $0x64] sm:$0xf0] }
  0x4c   : > { %v1294_v25 = vor.u32 %v1394_v22, %v1291_v24  ;;  %v1392_v29 = vld [vmem:[#allocation5 + $0x64] sm:$0xf]  ;;  %v1282_v30 = vor.u32 %v1393_v28, %v1281_v27  ;;  %v1283_v31 = vld [vmem:[#allocation5 + $0x68] sm:$0xf0]  ;;  %v1273_v32 = vld [vmem:[#allocation5 + $0x50] sm:$0xf] }
  0x4d   : > { %575 = vmatpush.bf16.msra.mxu0 %v1290_v23  ;;  %v1391_v33 = vld [vmem:[#allocation5 + $0x54] sm:$0xf0]  ;;  %v1286_v34 = vor.u32 %v1392_v29, %v1283_v31  ;;  %v1390_v35 = vld [vmem:[#allocation5 + $0x54] sm:$0xf]  ;;  %v1275_v36 = vld [vmem:[#allocation5 + $0x58] sm:$0xf0] }
  0x4e   : > { %589 = vmatpush.bf16.msra.mxu1 %v1294_v25  ;;  %v1274_v37 = vor.u32 %v1391_v33, %v1273_v32  ;;  %v1278_v38 = vor.u32 %v1390_v35, %v1275_v36  ;;  %v1265_v39 = vld [vmem:[#allocation5 + $0x40] sm:$0xf]  ;;  %v1389_v40 = vld [vmem:[#allocation5 + $0x44] sm:$0xf0]  ;;  %v1388_v42 = vld [vmem:[#allocation5 + $0x44] sm:$0xf] }
  0x4f   : > { %v1267_v43 = vld [vmem:[#allocation5 + $0x48] sm:$0xf0]  ;;  %v1266_v44 = vor.u32 %v1389_v40, %v1265_v39  ;;  %v1257_v46 = vld [vmem:[#allocation5 + $0x30] sm:$0xf]  ;;  %v1387_v47 = vld [vmem:[#allocation5 + $0x34] sm:$0xf0] }
  0x50   : > { %v1533_v3 = vpop.eup %1532  ;;  %v1270_v45 = vor.u32 %v1388_v42, %v1267_v43  ;;  %v1386_v49 = vld [vmem:[#allocation5 + $0x34] sm:$0xf]  ;;  %v1259_v50 = vld [vmem:[#allocation5 + $0x38] sm:$0xf0]  ;;  %v1258_v51 = vor.u32 %v1387_v47, %v1257_v46  ;;  %v1249_v53 = vld [vmem:[#allocation5 + $0x20] sm:$0xf] }
  0x51   : > { %v411_v4 = vmul.f32 128.0, %v1533_v3  ;;  %vm415_vm0 = vweird.f32 %v1533_v3  ;;  %v1535_v18 = vpop.eup %1534  ;;  %576 = vmatpush.bf16.msra.mxu0 %v1282_v30  ;;  %v1262_v52 = vor.u32 %v1386_v49, %v1259_v50  ;;  %v1385_v54 = vld [vmem:[#allocation5 + $0x24] sm:$0xf0]  ;;  %v1384_v56 = vld [vmem:[#allocation5 + $0x24] sm:$0xf]  ;;  %v1403_v20 = vld [vmem:[#allocation8 + $0x38] sm:$0xff] }
  0x52   : > { %408 = vadd.xlane.f32.xlu0 %v405_v1  ;;  %v428_v19 = vmul.f32 127.0, %v1535_v18  ;;  %590 = vmatpush.bf16.msra.mxu1 %v1286_v34  ;;  %vm432_vm1 = vweird.f32 %v1535_v18  ;;  %v1251_v57 = vld [vmem:[#allocation5 + $0x28] sm:$0xf0]  ;;  %v1250_v59 = vor.u32 %v1385_v54, %v1249_v53  ;;  %v1241_v62 = vld [vmem:[#allocation5 + $0x10] sm:$0xf]  ;;  %v1411_v21 = vld [vmem:[#allocation8 + $0x78] sm:$0xff] }
  0x53   : > { %v412_v5 = vsub.f32 1.0, %v411_v4  ;;  %v1254_v61 = vor.u32 %v1384_v56, %v1251_v57  ;;  %v1383_v63 = vld [vmem:[#allocation5 + $0x14] sm:$0xf0]  ;;  %v1233_v4 = vld [vmem:[#allocation5] sm:$0xf]  ;;  %747 = vmatpush.bf16.msra.mxu2 %v1403_v20  ;;  %761 = vmatpush.bf16.msra.mxu3 %v1411_v21  ;;  %v1401_v31 = vld [vmem:[#allocation8 + $0x28] sm:$0xff] }
  0x54   : > { %v429_v26 = vsub.f32 1.0, %v428_v19  ;;  %v1242_v2 = vor.u32 %v1383_v63, %v1241_v62  ;;  %v1402_v24 = vld [vmem:[#allocation8 + $0x30] sm:$0xff]  ;;  %v1409_v32 = vld [vmem:[#allocation8 + $0x68] sm:$0xff]  ;;  %s2244_s4 = sld [smem:[#allocation26_spill]]  ;;  %v1399_v53 = vld [vmem:[#allocation8 + $0x18] sm:$0xff]  ;;  %v786_v63 = vlaneseq  ;;  %s1359_s23 = sshll.u32 %s1912_s9, 4 }
  0x55   : > { %v413_v6 = vmul.f32 %v1533_v3, %v412_v5  ;;  %577 = vmatpush.bf16.msra.mxu0 %v1274_v37  ;;  %v1381_v5 = vld [vmem:[#allocation5 + $0x4] sm:$0xf0]  ;;  %v1410_v25 = vld [vmem:[#allocation8 + $0x70] sm:$0xff]  ;;  %v1407_v54 = vld [vmem:[#allocation8 + $0x58] sm:$0xff]  ;;  %s2069_s24 = scalar_lea.vmem [#allocation11], %s1224_s1  ;;  %s1230_s21 = sshll.u32 %s2008_s20, 1 }
  0x56   : > { %v430_v41 = vmul.f32 %v1535_v18, %v429_v26  ;;  %591 = vmatpush.bf16.msra.mxu1 %v1278_v38  ;;  %v1397_v56 = vld [vmem:[#allocation8 + $0x8] sm:$0xff]  ;;  %s2089_s14 = scalar_lea.vmem [#allocation13], %s1230_s21  ;;  %s1228_s19 = sshll.u32 %s2008_s20, 3 }
  0x57   : > { %v414_v7 = vadd.f32 %v1533_v3, %v413_v6  ;;  %v1380_v6 = vld [vmem:[#allocation5 + $0x4] sm:$0xf]  ;;  %748 = vmatpush.bf16.msra.mxu2 %v1402_v24  ;;  %762 = vmatpush.bf16.msra.mxu3 %v1410_v25  ;;  %v1405_v57 = vld [vmem:[#allocation8 + $0x48] sm:$0xff]  ;;  %s2107_s15 = scalar_lea.vmem [#allocation10], %s1228_s19  ;;  %s2245_s6 = sld [smem:[#allocation27_spill]] }
  0x58   : > { %v431_v48 = vadd.f32 %v1535_v18, %v430_v41  ;;  %s951_s2 = sand.u32 1, %s1912_s9   ;;  %s991_s17 = sshll.u32 %s2069_s24, 4  ;;  %s992_s17 = int_to_ptr.vmem [resolvable:$true] %s991_s17 }
  0x59   : > { %v416_v8 = vsel %vm415_vm0, %v1533_v3, %v414_v7  ;;  %578 = vmatpush.bf16.msra.mxu0 %v1266_v44  ;;  %v1235_v7 = vld [vmem:[#allocation5 + $0x8] sm:$0xf0]  ;;  %vm869_vm0 = vcmask 1040384   ;;  %s2132_s11 = scalar_lea.sflag [#allocation12], %s951_s2 }
  0x5a   : > { %592 = vmatpush.bf16.msra.mxu1 %v1270_v45  ;;  %v433_v55 = vsel %vm432_vm1, %v1535_v18, %v431_v48  ;;  %v2052_v46 = vld [vmem:[%s2244_s4] ss:$0 sm:$0xff]  ;;  %vm874_vm1 = vcmp.lt.s32.totalorder %v786_v63, 256 }
  0x5b   : > { %749 = vmatpush.bf16.msra.mxu2 %v1401_v31  ;;  %763 = vmatpush.bf16.msra.mxu3 %v1409_v32 }
  0x5d   : > { %579 = vmatpush.bf16.msra.mxu0 %v1258_v51  ;;  %s990_s13 = scalar_lea.hbm %s2245_s6, %s1359_s23  ;;  %s1684_s3 = scalar_lea.hbm %s2245_s6, 32 }
  0x5e   : > { %593 = vmatpush.bf16.msra.mxu1 %v1262_v52  ;;  %v1408_v52 = vld [vmem:[#allocation8 + $0x60] sm:$0xff]  ;;  %s993_s1 = sshll.u32 %s990_s13, 4  ;;  %s994_s1 = int_to_ptr.hbm [resolvable:$true] %s993_s1 }
  0x5f   : > { %764 = vmatpush.bf16.msra.mxu3 %v1408_v52  ;;  %s1678_s16 = sshra.s32 %s994_s1, 4  ;;  %s1679_s16 = int_to_ptr.hbm [resolvable:$true] %s1678_s16 }
  0x60   : > { %s1680_s21 = scalar_lea.hbm %s1679_s16, 16  ;;  %p1685_p11 = scmp.lt.s32.totalorder %s1679_s16, %s2245_s6 }
  0x61   : > { %580 = vmatpush.bf16.msra.mxu0 %v1250_v59  ;;  %v1404_v59 = vld [vmem:[#allocation8 + $0x40] sm:$0xff]  ;;  %p1681_p1 = scmp.ne.s32.totalorder %s1679_s16, %s1680_s21  ;;  %p1686_p9 = scmp.lt.s32.totalorder %s1684_s3, %s1680_s21 }
  0x62   : > { %594 = vmatpush.bf16.msra.mxu1 %v1254_v61 }
  0x63   : > { %765 = vmatpush.bf16.msra.mxu3 %v1407_v54  ;;  %p1682_p4 = pnand %p1681_p1, %p1978_p3  ;;  %p1687_p2 = por %p1686_p9, %p1685_p11 }
  0x65   : > { %581 = vmatpush.bf16.msra.mxu0 %v1242_v2  ;;  %p1683_p8 = pneg %p1682_p4 }
  0x67   : > { %p1688_p10 = pnand %p1687_p2, %p1683_p8 }
  0xbd   : > { %v407_v9 = vpop.xlane.xlu0 %406 }
  0xbe   : > { %v2026_v10 = vmul.f32 %v416_v8, %v407_v9  ;;  %v1234_v9 = vor.u32 %v1381_v5, %v1233_v4  ;;  %v787_v4 = vshrl.u32 %v786_v63, 7  ;;  %v789_v5 = vstv %s1359_s23 }
  0xc0   : > { %v2029_v11 = vsub.f32 %v404_v0, %v2026_v10  ;;  %v1382_v0 = vld [vmem:[#allocation5 + $0x14] sm:$0xf]  ;;  %582 = vmatpush.bf16.msra.mxu0 %v1234_v9 }
  0xc2   : > { %v421_v12 = vmul.f32 %v2029_v11, %v2029_v11 }
  0xc4   : > { %423 = vadd.xlane.f32.xlu1 %v421_v12 }
  0xc5   : > { %v409_v13 = vpop.xlane.xlu0 %408 }
  0xc6   : > { %v2033_v14 = vmul.f32 %v416_v8, %v409_v13 }
  0xc8   : > { %v2036_v15 = vsub.f32 %v405_v1, %v2033_v14  ;;  %v1243_v1 = vld [vmem:[#allocation5 + $0x18] sm:$0xf0] }
  0xc9   : > { %v1246_v3 = vor.u32 %v1382_v0, %v1243_v1 }
  0xca   : > { %v422_v16 = vmul.f32 %v2036_v15, %v2036_v15 }
  0xcb   : > { %595 = vmatpush.bf16.msra.mxu1 %v1246_v3 }
  0xcc   : > { %425 = vadd.xlane.f32.xlu1 %v422_v16  ;;  %v1238_v16 = vor.u32 %v1380_v6, %v1235_v7 }
  0xcf   : > { %596 = vmatpush.bf16.msra.mxu1 %v1238_v16 }
 0x137   : > { %v424_v58 = vpop.xlane.xlu1 %423 }
 0x138   : > { %v434_v60 = vmul.f32 %v433_v55, %v424_v58  ;;  %v1396_v58 = vld [vmem:[#allocation8] sm:$0xff] }
 0x13a   : > { %1536 = vrsqrt.f32 %v434_v60  ;;  %vm443_vm2 = vcmp.eq.f32.partialorder %v434_v60, inf  ;;  %v446_v30 = vand.u32 2147483648, %v434_v60  ;;  %vm445_vm3 = vcmp.eq.f32.partialorder %v434_v60, 0.0 }
 0x13f   : > { %v426_v8 = vpop.xlane.xlu1 %425 }
 0x140   : > { %v1537_v12 = vpop.eup %1536  ;;  %v435_v13 = vmul.f32 %v433_v55, %v426_v8  ;;  %v1398_v55 = vld [vmem:[#allocation8 + $0x10] sm:$0xff]  ;;  %v788_v8 = vadd.s32 8, %v787_v4 }
 0x141   : > { %v437_v17 = vmul.f32 %v1537_v12, %v434_v60 }
 0x142   : > { %1538 = vrsqrt.f32 %v435_v13  ;;  %vm455_vm4 = vcmp.eq.f32.partialorder %v435_v13, inf  ;;  %v458_v40 = vand.u32 2147483648, %v435_v13  ;;  %vm457_vm5 = vcmp.eq.f32.partialorder %v435_v13, 0.0 }
 0x143   : > { %v438_v18 = vmul.f32 %v1537_v12, %v437_v17  ;;  %v2072_v21 = vadd.s32 %v789_v5, %v788_v8 }
 0x145   : > { %v439_v19 = vmul.f32 0.5, %v438_v18  ;;  %vm793_vm11 = vcmp.lt.s32.totalorder %v2072_v21, 30 }
 0x147   : > { %v440_v22 = vsub.f32 1.5, %v439_v19 }
 0x148   : > { %v1539_v23 = vpop.eup %1538 }
 0x149   : > { %v449_v26 = vmul.f32 %v1539_v23, %v435_v13  ;;  %v441_v27 = vmul.f32 %v1537_v12, %v440_v22  ;;  %v2065_v12 = vadd.s32 %v789_v5, %v787_v4 }
 0x14b   : > { %v442_v28 = vmul.f32 %v441_v27, %v434_v60  ;;  %v450_v29 = vmul.f32 %v1539_v23, %v449_v26  ;;  %vm792_vm10 = vcmp.lt.s32.totalorder %v2065_v12, 30 }
 0x14d   : > { %v444_v33 = vsel %vm443_vm2, %v434_v60, %v442_v28  ;;  %v451_v34 = vmul.f32 0.5, %v450_v29  ;;  %v467_v60 = vld [vmem:[#allocation7] sm:$0x3]  ;;  %vm880_vm2 = vcmask 7168  }
 0x14e   : > { %v2040_v35 = vsel %vm445_vm3, %v446_v30, %v444_v33  ;;  %v491_v61 = vperm.slane %v467_v60, 0  ;;  %v492_v62 = vperm.slane %v467_v60, 1 }
 0x14f   : > { %v452_v36 = vsub.f32 1.5, %v451_v34  ;;  %v460_v38 = vadd.f32 1e-05, %v2040_v35 }
 0x151   : > { %v453_v37 = vmul.f32 %v1539_v23, %v452_v36  ;;  %1540 = vrcp.f32 %v460_v38 }
 0x153   : > { %v454_v39 = vmul.f32 %v453_v37, %v435_v13 }
 0x155   : > { %v456_v41 = vsel %vm455_vm4, %v435_v13, %v454_v39  ;;  %v1841_v13 = vmov 0.0  }
 0x156   : > { %v2043_v42 = vsel %vm457_vm5, %v458_v40, %v456_v41 }
 0x157   : > { %v461_v43 = vadd.f32 1e-05, %v2043_v42  ;;  %v1541_v44 = vpop.eup %1540 }
 0x158   : > { %v2047_v45 = vmul.f32 %v1541_v44, %v2029_v11  ;;  %v1400_v11 = vld [vmem:[#allocation8 + $0x20] sm:$0xff] }
 0x159   : > { %1542 = vrcp.f32 %v461_v43  ;;  %750 = vmatpush.bf16.msra.mxu2 %v1400_v11 }
 0x15a   : > { %v471_v49 = vsub.f32 %v2047_v45, %v2052_v46 }
 0x15d   : > { %751 = vmatpush.bf16.msra.mxu2 %v1399_v53 }
 0x15f   : > { %v1543_v47 = vpop.eup %1542 }
 0x160   : > { %v2055_v48 = vmul.f32 %v1543_v47, %v2036_v15  ;;  %v1406_v15 = vld [vmem:[#allocation8 + $0x50] sm:$0xff] }
 0x161   : > { %752 = vmatpush.bf16.msra.mxu2 %v1398_v55  ;;  %766 = vmatpush.bf16.msra.mxu3 %v1406_v15 }
 0x162   : > { %v472_v50 = vsub.f32 %v2055_v48, %v2052_v46 }
 0x164   : > { %v473_v51 = vpack.c.bf16 %v472_v50, %v471_v49 }
 0x165   : > { %753 = vmatpush.bf16.msra.mxu2 %v1397_v56  ;;  %767 = vmatpush.bf16.msra.mxu3 %v1405_v57 }
 0x166   : > { %583 = vmatmul.bf16.vlgmr.msra.gmra.mxu0 %v473_v51  ;;  %597 = vmatmul.bf16.vlgmr.msra.gmra.mxu1 %v473_v51 }
 0x169   : > { %754 = vmatpush.bf16.msra.mxu2 %v1396_v58  ;;  %768 = vmatpush.bf16.msra.mxu3 %v1404_v59 }
 0x1e3   : > { %v584_v0 = vpop.f32.mrf.mxu0  ;;  %v598_v1 = vpop.f32.mrf.mxu1 }
 0x1e4   : > { %v585_v2 = vadd.f32 %v584_v0, %v491_v61  ;;  %v599_v3 = vadd.f32 %v598_v1, %v492_v62 }
 0x1e6   : > { %v603_v6 = vmax.f32 %v585_v2, 0.0  ;;  %v604_v7 = vmax.f32 %v599_v3, 0.0 }
 0x1e8   : > { %vm804_vm6 = vcmp.gt.f32.partialorder %v603_v6, 0.0  ;;  %vm805_vm7 = vcmp.gt.f32.partialorder %v604_v7, 0.0  ;;  %v607_v9 = vpack.c.bf16 %v604_v7, %v603_v6  ;;  %vm824_vm8 = vcmp.gt.f32.partialorder %v603_v6, 0.01 }
 0x1e9   : > { %v1360_v16 = vsel %vm804_vm6, 1.0, %v1841_v13  ;;  %v1361_v17 = vsel %vm805_vm7, 1.0, %v1841_v13  ;;  %vm825_vm9 = vcmp.gt.f32.partialorder %v604_v7, 0.01  ;;  %v1364_v22 = vsel %vm824_vm8, 1.0, %v1841_v13 }
 0x1ea   : > { %v816_v18 = vadd.f32 %v1361_v17, %v1360_v16  ;;  %783 = vst [vmem:[%s2069_s24] sm:$0xff] %v607_v9  ;;  %v1365_v23 = vsel %vm825_vm9, 1.0, %v1841_v13  ;;  %v848_v29 = vsel %vm792_vm10, %v603_v6, 0.0  ;;  %v643_v39 = vunpack.c.l.b16 %v607_v9 }
 0x1eb   : > { %v586_v19 = vpop.f32.mrf.mxu0  ;;  %v600_v20 = vpop.f32.mrf.mxu1  ;;  %v2075_v26 = vadd.f32 %v1365_v23, %v1364_v22  ;;  %v849_v40 = vsel %vm792_vm10, %v604_v7, 0.0  ;;  %v644_v47 = vunpack.c.h.b16 %v607_v9 }
 0x1ec   : > { %v587_v24 = vadd.f32 %v586_v19, %v491_v61  ;;  %v601_v25 = vadd.f32 %v600_v20, %v492_v62  ;;  %817 = vadd.xlane.f32.xlu0 %v816_v18 }
 0x1ee   : > { %v605_v27 = vmax.f32 %v587_v24, 0.0  ;;  %v606_v28 = vmax.f32 %v601_v25, 0.0 }
 0x1f0   : > { %vm806_vm12 = vcmp.gt.f32.partialorder %v605_v27, 0.0  ;;  %vm807_vm13 = vcmp.gt.f32.partialorder %v606_v28, 0.0  ;;  %vm826_vm14 = vcmp.gt.f32.partialorder %v605_v27, 0.01  ;;  %vm827_vm15 = vcmp.gt.f32.partialorder %v606_v28, 0.01 }
 0x1f1   : > { %v1362_v30 = vsel %vm806_vm12, 1.0, %v1841_v13  ;;  %v1363_v31 = vsel %vm807_vm13, 1.0, %v1841_v13  ;;  %v1366_v32 = vsel %vm826_vm14, 1.0, %v1841_v13  ;;  %v1367_v33 = vsel %vm827_vm15, 1.0, %v1841_v13 }
 0x1f2   : > { %v819_v34 = vadd.f32 %v1363_v31, %v1362_v30  ;;  %v839_v36 = vadd.f32 %v1367_v33, %v1366_v32  ;;  %v608_v37 = vpack.c.bf16 %v606_v28, %v605_v27  ;;  %v850_v38 = vsel %vm793_vm11, %v605_v27, 0.0 }
 0x1f3   : > { %v851_v41 = vsel %vm793_vm11, %v606_v28, 0.0  ;;  %v852_v43 = vadd.f32 %v850_v38, %v848_v29 }
 0x1f4   : > { %820 = vadd.xlane.f32.xlu1 %v819_v34  ;;  %840 = vadd.xlane.f32.xlu0 %v839_v36  ;;  %v645_v44 = vunpack.c.l.b16 %v608_v37  ;;  %784 = vst [vmem:[%s2069_s24 + $0x8] sm:$0xff] %v608_v37  ;;  %v646_v49 = vunpack.c.h.b16 %v608_v37  ;;  %v859_v50 = vadd.f32 %v851_v41, %v849_v40 }
 0x1f5   : > { %v853_v51 = vrot.slane %v852_v43, 4 }
 0x1f6   : > { %v647_v11 = vpack.c.b16 %v645_v44, %v643_v39  ;;  %v648_v52 = vpack.c.b16 %v646_v49, %v644_v47  ;;  %v860_v53 = vrot.slane %v859_v50, 4 }
 0x1f7   : > { %v854_v54 = vadd.f32 %v853_v51, %v852_v43 }
 0x1f8   : > { %755 = vmatmul.bf16.vlgmr.msra.gmra.mxu2 %v647_v11  ;;  %769 = vmatmul.bf16.vlgmr.msra.gmra.mxu3 %v648_v52  ;;  %v861_v55 = vadd.f32 %v860_v53, %v859_v50 }
 0x1f9   : > { %v855_v15 = vrot.slane %v854_v54, 2 }
 0x1fa   : > { %v862_v56 = vrot.slane %v861_v55, 2 }
 0x1fb   : > { %v856_v57 = vadd.f32 %v855_v15, %v854_v54 }
 0x1fc   : > { %v863_v58 = vadd.f32 %v862_v56, %v861_v55 }
 0x1fd   : > { %v857_v59 = vrot.slane %v856_v57, 1 }
 0x1fe   : > { %v864_v60 = vrot.slane %v863_v58, 1 }
 0x1ff   : > { %v858_v62 = vadd.f32 %v857_v59, %v856_v57 }
 0x200   : > { %v865_v61 = vadd.f32 %v864_v60, %v863_v58 }
 0x202   : > { %v868_v0 = vrot.slane %v865_v61, 7 }
 0x204   : > { %v870_v1 = vsel %vm869_vm0, %v858_v62, %v868_v0 }
 0x205   : > { %876 = vst.msk [vmem:[%s2089_s14] sm:$0x3] %vm874_vm1, %v870_v1 }
 0x25f   : > { %v818_v2 = vpop.xlane.xlu0 %817 }
 0x260   : > { %v822_v3 = vsel %vm792_vm10, %v818_v2, 0.0 }
 0x261   : > { %v912_v4 = vmul.f32 %v822_v3, %v822_v3 }
 0x263   : > { %v914_v8 = vsel %vm880_vm2, %v912_v4, 0.0 }
 0x267   : > { %v821_v5 = vpop.xlane.xlu1 %820  ;;  %v841_v38 = vpop.xlane.xlu0 %840 }
 0x268   : > { %v823_v6 = vsel %vm793_vm11, %v821_v5, 0.0  ;;  %v843_v39 = vsel %vm793_vm11, %v841_v38, 0.0 }
 0x269   : > { %v913_v7 = vmul.f32 %v823_v6, %v823_v6  ;;  %v931_v43 = vsel %vm880_vm2, %v843_v39, 0.0 }
 0x26b   : > { %v915_v9 = vsel %vm880_vm2, %v913_v7, 0.0 }
 0x26c   : > { %v916_v13 = vadd.f32 %v915_v9, %v914_v8 }
 0x26e   : > { %917 = vadd.xlane.f32.xlu0 %v916_v13 }
 0x27b   : > { %v756_v16 = vpop.f32.mrf.mxu2  ;;  %v770_v17 = vpop.f32.mrf.mxu3 }
 0x27c   : > { %v757_v18 = vadd.f32 %v2052_v46, %v756_v16 }
 0x27e   : > { %v771_v19 = vadd.f32 %v770_v17, %v757_v18 }
 0x280   : > { %v794_v20 = vsub.f32 %v771_v19, %v2047_v45  ;;  %v775_v27 = vmul.f32 %v771_v19, %v2040_v35  ;;  %v897_v35 = vsel %vm880_vm2, %v823_v6, 0.0 }
 0x282   : > { %v796_v22 = vmul.f32 %v794_v20, %v794_v20  ;;  %v777_v31 = vadd.f32 %v775_v27, %v2026_v10 }
 0x283   : > { %v758_v23 = vpop.f32.mrf.mxu2  ;;  %v772_v25 = vpop.f32.mrf.mxu3 }
 0x284   : > { %v759_v24 = vadd.f32 %v2052_v46, %v758_v23  ;;  %798 = vadd.xlane.f32.xlu2 %v796_v22  ;;  %v896_v46 = vsel %vm880_vm2, %v822_v3, 0.0 }
 0x286   : > { %v773_v28 = vadd.f32 %v772_v25, %v759_v24 }
 0x288   : > { %v776_v29 = vmul.f32 %v773_v28, %v2043_v42  ;;  %v795_v30 = vsub.f32 %v773_v28, %v2055_v48  ;;  %v898_v42 = vadd.f32 %v897_v35, %v896_v46 }
 0x28a   : > { %v778_v32 = vadd.f32 %v776_v29, %v2033_v14  ;;  %v797_v33 = vmul.f32 %v795_v30, %v795_v30 }
 0x28c   : > { %v1418_v45 = vpack.c.bf16 %v778_v32, %v777_v31  ;;  %800 = vadd.xlane.f32.xlu2 %v797_v33 }
 0x28e   : > { %1419 = vst [vmem:[%s2107_s15] sm:$0xff] %v1418_v45  }
 0x294   : > { %837 = vadd.xlane.f32.xlu2 %v2075_v26 }
 0x29c   : > { %899 = vadd.xlane.f32.xlu2 %v898_v42 }
 0x2f7   : > { %v799_v48 = vpop.xlane.xlu2 %798 }
 0x2f8   : > { %v802_v10 = vsel %vm792_vm10, %v799_v48, 0.0 }
 0x2f9   : > { %v881_v36 = vsel %vm880_vm2, %v802_v10, 0.0 }
 0x2ff   : > { %v801_v14 = vpop.xlane.xlu2 %800 }
 0x300   : > { %v803_v34 = vsel %vm793_vm11, %v801_v14, 0.0 }
 0x301   : > { %v882_v26 = vsel %vm880_vm2, %v803_v34, 0.0 }
 0x302   : > { %v883_v37 = vadd.f32 %v882_v26, %v881_v36 }
 0x304   : > { %884 = vadd.xlane.f32.xlu1 %v883_v37 }
 0x307   : > { %v838_v40 = vpop.xlane.xlu2 %837 }
 0x308   : > { %v842_v41 = vsel %vm792_vm10, %v838_v40, 0.0 }
 0x309   : > { %v930_v44 = vsel %vm880_vm2, %v842_v41, 0.0 }
 0x30a   : > { %v932_v47 = vadd.f32 %v931_v43, %v930_v44 }
 0x30c   : > { %933 = vadd.xlane.f32.xlu1 %v932_v47 }
 0x30d   : > { %1691 = shalt.err (!%p1688_p10)
}
 0x30e   : > { %s1842_s24 = smov 128   ;;  %s1843_s26 = smov 8  }
 0x30f   : > { %1443 = dma.vmem_to_hbm [thread:$0]  (%p1978_p3), %s992_s17, 256, %s994_s1, %s2132_s11, %s1842_s24, %s1842_s24, %s1843_s26  }
 0x310   : > { %s1412_s0 = sshll.u32 %s1912_s9, 3  ;;  %s973_s3 = sshll.u32 %s2107_s15, 4  ;;  %s974_s3 = int_to_ptr.vmem [resolvable:$true] %s973_s3 }
 0x311   : > { %s972_s16 = scalar_lea.hbm %s2219_s5, %s1412_s0  ;;  %s1376_s19 = sshll.u32 %s1912_s9, 1 }
 0x312   : > { %s975_s21 = sshll.u32 %s972_s16, 4  ;;  %s947_s18 = scalar_lea.sflag [#allocation4], %s2008_s20  ;;  %s976_s21 = int_to_ptr.hbm [resolvable:$true] %s975_s21 }
 0x313   : > { %s1706_s23 = sshra.s32 %s976_s21, 4  ;;  %s1712_s17 = scalar_lea.hbm %s2219_s5, 16  ;;  %s1707_s23 = int_to_ptr.hbm [resolvable:$true] %s1706_s23 }
 0x314   : > { %s1708_s4 = scalar_lea.hbm %s1707_s23, 8  ;;  %p1713_p5 = scmp.lt.s32.totalorder %s1707_s23, %s2219_s5 }
 0x315   : > { %p1709_p12 = scmp.ne.s32.totalorder %s1707_s23, %s1708_s4  ;;  %p1714_p7 = scmp.lt.s32.totalorder %s1712_s17, %s1708_s4 }
 0x317   : > { %p1710_p13 = pnand %p1709_p12, %p1978_p3  ;;  %p1715_p1 = por %p1714_p7, %p1713_p5 }
 0x319   : > { %p1711_p0 = pneg %p1710_p13 }
 0x31b   : > { %p1716_p4 = pnand %p1715_p1, %p1711_p0 }
 0x31d   : > { %1719 = shalt.err (!%p1716_p4)
}
 0x31e   : > { %s1844_s15 = smov 64   ;;  %s1845_s0 = smov 4  }
 0x31f   : > { %1442 = dma.vmem_to_hbm [thread:$0]  (%p1978_p3), %s974_s3, 128, %s976_s21, %s947_s18, %s1844_s15, %s1844_s15, %s1845_s0  }
 0x320   : > { %s1006_s6 = scalar_lea.hbm %s2221_s7, %s1376_s19  ;;  %s1008_s16 = sshll.u32 %s2089_s14, 4  ;;  %s1009_s16 = int_to_ptr.vmem [resolvable:$true] %s1008_s16 }
 0x321   : > { %s1010_s1 = sshll.u32 %s1006_s6, 4  ;;  %s1740_s26 = scalar_lea.hbm %s2221_s7, 4  ;;  %s1011_s1 = int_to_ptr.hbm [resolvable:$true] %s1010_s1 }
 0x322   : > { %s1734_s23 = sshra.s32 %s1011_s1, 4  ;;  %s1735_s23 = int_to_ptr.hbm [resolvable:$true] %s1734_s23 }
 0x323   : > { %s1736_s4 = scalar_lea.hbm %s1735_s23, 2  ;;  %p1741_p2 = scmp.lt.s32.totalorder %s1735_s23, %s2221_s7 }
 0x324   : > { %p1737_p8 = scmp.ne.s32.totalorder %s1735_s23, %s1736_s4  ;;  %p1742_p10 = scmp.lt.s32.totalorder %s1740_s26, %s1736_s4 }
 0x326   : > { %p1738_p11 = pnand %p1737_p8, %p1978_p3  ;;  %p1743_p12 = por %p1742_p10, %p1741_p2 }
 0x328   : > { %p1739_p9 = pneg %p1738_p11 }
 0x32a   : > { %p1744_p13 = pnand %p1743_p12, %p1739_p9 }
 0x32c   : > { %1747 = shalt.err (!%p1744_p13)
}
 0x32d   : > { %1444 = dma.vmem_to_hbm [thread:$0]  (%p1978_p3), %s1009_s16, 32, %s1011_s1, %s2132_s11   ;;  %v900_v12 = vpop.xlane.xlu2 %899  ;;  %v918_v21 = vpop.xlane.xlu0 %917  ;;  %v878_v13 = vand.u32 127, %v786_v63 }
 0x32e   : > { %v901_v49 = vrot.slane %v900_v12, 4  ;;  %v919_v50 = vrot.slane %v918_v21, 4  ;;  %s1019_s0 = scalar_lea.hbm %s2222_s8, %s1912_s9  ;;  %s400_s13 = scalar_lea.vmem [#allocation14], %s2008_s20 }
 0x32f   : > { %vm879_vm3 = vcmp.eq.s32.totalorder %v878_v13, 0  ;;  %vm895_vm4 = vcmp.eq.s32.totalorder %v878_v13, 1  ;;  %vm911_vm5 = vcmp.eq.s32.totalorder %v878_v13, 2  ;;  %vm929_vm6 = vcmp.eq.s32.totalorder %v878_v13, 3  ;;  %s1021_s2 = sshll.u32 %s400_s13, 4  ;;  %s1023_s16 = sshll.u32 %s1019_s0, 4  ;;  %s1022_s2 = int_to_ptr.vmem [resolvable:$true] %s1021_s2  ;;  %s1024_s16 = int_to_ptr.hbm [resolvable:$true] %s1023_s16 }
 0x330   : > { %v902_v51 = vadd.f32 %v901_v49, %v900_v12  ;;  %v920_v11 = vadd.f32 %v919_v50, %v918_v21  ;;  %s962_s1 = scalar_lea.sflag [#allocation15], %s2008_s20  ;;  %s1762_s23 = sshra.s32 %s1024_s16, 4  ;;  %s1763_s23 = int_to_ptr.hbm [resolvable:$true] %s1762_s23 }
 0x331   : > { %s1764_s4 = scalar_lea.hbm %s1763_s23, 1  ;;  %s1768_s24 = scalar_lea.hbm %s2222_s8, 2 }
 0x332   : > { %v903_v52 = vrot.slane %v902_v51, 2  ;;  %v921_v54 = vrot.slane %v920_v11, 2  ;;  %p1765_p0 = scmp.ne.s32.totalorder %s1763_s23, %s1764_s4  ;;  %p1769_p1 = scmp.lt.s32.totalorder %s1763_s23, %s2222_s8 }
 0x333   : > { %p1770_p4 = scmp.lt.s32.totalorder %s1768_s24, %s1764_s4 }
 0x334   : > { %v904_v56 = vadd.f32 %v903_v52, %v902_v51  ;;  %v922_v57 = vadd.f32 %v921_v54, %v920_v11  ;;  %p1766_p5 = pnand %p1765_p0, %p1978_p3 }
 0x335   : > { %p1771_p8 = por %p1770_p4, %p1769_p1 }
 0x336   : > { %v905_v61 = vrot.slane %v904_v56, 1  ;;  %v923_v1 = vrot.slane %v922_v57, 1  ;;  %p1767_p7 = pneg %p1766_p5 }
 0x338   : > { %v906_v4 = vadd.f32 %v905_v61, %v904_v56  ;;  %v924_v6 = vadd.f32 %v923_v1, %v922_v57  ;;  %p1772_p11 = pnand %p1771_p8, %p1767_p7 }
 0x377   : > { %v885_v53 = vpop.xlane.xlu1 %884 }
 0x378   : > { %v886_v55 = vrot.slane %v885_v53, 4 }
 0x37a   : > { %v887_v15 = vadd.f32 %v886_v55, %v885_v53 }
 0x37c   : > { %v888_v58 = vrot.slane %v887_v15, 2 }
 0x37e   : > { %v889_v59 = vadd.f32 %v888_v58, %v887_v15 }
 0x37f   : > { %v934_v60 = vpop.xlane.xlu1 %933 }
 0x380   : > { %v935_v62 = vrot.slane %v934_v60, 4  ;;  %v890_v0 = vrot.slane %v889_v59, 1 }
 0x382   : > { %v936_v2 = vadd.f32 %v935_v62, %v934_v60  ;;  %v891_v3 = vadd.f32 %v890_v0, %v889_v59 }
 0x384   : > { %v937_v5 = vrot.slane %v936_v2, 2  ;;  %1420 = vpush %v891_v3 }
 0x385   : > { %1422 = vpush %v906_v4 }
 0x386   : > { %v938_v7 = vadd.f32 %v937_v5, %v936_v2  ;;  %1424 = vpush %v924_v6 }
 0x388   : > { %v939_v8 = vrot.slane %v938_v7, 1 }
 0x38a   : > { %v940_v9 = vadd.f32 %v939_v8, %v938_v7 }
 0x38c   : > { %1426 = vpush %v940_v9 }
 0x3b5   : > { %s1421_s14 = spop %1420 }
 0x3b6   : > { %v893_v16 = vstv %s1421_s14  ;;  %s1423_s11 = spop %1422 }
 0x3b7   : > { %v894_v17 = vsel %vm879_vm3, %v893_v16, 0.0  ;;  %v908_v18 = vstv %s1423_s11  ;;  %s1425_s19 = spop %1424 }
 0x3b8   : > { %v909_v19 = vsel %vm895_vm4, %v908_v18, 0.0  ;;  %v926_v22 = vstv %s1425_s19 }
 0x3b9   : > { %v910_v20 = vadd.f32 %v909_v19, %v894_v17  ;;  %v927_v63 = vsel %vm911_vm5, %v926_v22, 0.0 }
 0x3bb   : > { %v928_v23 = vadd.f32 %v927_v63, %v910_v20 }
 0x3bd   : > { %s1427_s6 = spop %1426 }
 0x3be   : > { %v942_v24 = vstv %s1427_s6 }
 0x3bf   : > { %v943_v25 = vsel %vm929_vm6, %v942_v24, 0.0 }
 0x3c0   : > { %v944_v27 = vadd.f32 %v943_v25, %v928_v23 }
 0x3c2   : > { %945 = vst [vmem:[%s400_s13] sm:$0x1] %v944_v27 }
 0x3c3   : > { %1775 = shalt.err (!%p1772_p11)
}
 0x3c4   : > { %1445 = dma.vmem_to_hbm [thread:$0]  (%p1978_p3), %s1022_s2, 16, %s1024_s16, %s962_s1  }
 0x3c5 PF: > { %s1035_s20 = sand.u32 1, %s1818_s27   ;;  %p2246_p9 = scmp.ge.s32.totalorder %s1830_s30, 2 }
 0x3c6   : > { %s1036_s21 = scalar_lea.sflag [#allocation4], %s1035_s20 }
 0x3c7   : > { %p1465_p2 = pnand %p2246_p9, %p1928_p6 }
 0x3c9   : > { %p1466_p10 = pneg %p1465_p2 }
 0x3cb   : > { %1805 = dma.done.wait (%p1466_p10), %s1036_s21, 128  }
 0x3cc   : > { %1807 = vsyncadd (%p1466_p10), %s1036_s21, 4294967168  ;;  %s2247_s14 = sadd.s32 4294967294, %s1830_s30  }
 0x3cd   : > { %s1045_s11 = sand.u32 1, %s2247_s14  }
 0x3ce   : > { %s1046_s19 = scalar_lea.sflag [#allocation12], %s1045_s11 }
 0x3cf   : > { %1809 = dma.done.wait (%p1466_p10), %s1046_s19, 288  }
 0x3d0   : > { %1811 = vsyncadd (%p1466_p10), %s1046_s19, 4294967008  ;;  %s1066_s22 = scalar_lea.sflag [#allocation15], %s1035_s20 }
 0x3d1   : > { %1813 = dma.done.wait (%p1466_p10), %s1066_s22, 16  }
 0x3d2   : > { %1815 = vsyncadd (%p1466_p10), %s1066_s22, 4294967280  ;;  %p30_p3 = scmp.ge.s32.totalorder %s1965_s25, 4   ;;  %s2248_s27 = smov %s1822_s28 }
 0x3d3   : > { %s2249_s28 = smov %s1826_s29  ;;  %s2250_s29 = smov %s1974_s10 }
 0x3d4   : > { %s2251_s30 = smov %s1965_s25  ;;  %32 = sbr.rel (!%p30_p3) target bundleno = 18 (0x12), region = 146 }
 0x3d9   :  { %1071 = vsyncpa [#allocation3], 1 }
 0x3da   :  { %1073 = vsyncpa [#allocation3 + $0x1], 1 }
 0x3db   :  { %1074 = vsyncpa [#allocation6], 1 }
 0x3dc   :  { %1075 = vsyncpa [#allocation9], 1 }
 0x3dd   :  { %1076 = vsyncpa [#allocation4], 1 }
 0x3de   :  { %1078 = vsyncpa [#allocation4 + $0x1], 1 }
 0x3df   :  { %1079 = vsyncpa [#allocation12], 1 }
 0x3e0   :  { %1081 = vsyncpa [#allocation12 + $0x1], 1 }
 0x3e1   :  { %1082 = vsyncpa [#allocation15], 1 }
 0x3e2   :  { %1084 = vsyncpa [#allocation15 + $0x1], 1 }

// kernel: tpu_custom_call.1
= control target key start
LH: loop header
LB: loop body
LE: loop exit
PB: predicated region body
PF: predicated region fallthrough
CT: control target
= control target key end

     0   :  { %s2214_s0 = inlined_call_operand.hbm [shape: f32[30,128], index: 0, kind: input, shape index: {}]   ;;  %s2215_s1 = inlined_call_operand.hbm [shape: bf16[128,256], index: 1, kind: input, shape index: {}]   ;;  %s2216_s2 = inlined_call_operand.hbm [shape: f32[1,256], index: 2, kind: input, shape index: {}]   ;;  %s2217_s3 = inlined_call_operand.hbm [shape: bf16[256,128], index: 3, kind: input, shape index: {}]   ;;  %s2218_s4 = inlined_call_operand.vmem [shape: f32[1,128], index: 4, kind: input, shape index: {}]   ;;  %s2219_s5 = inlined_call_operand.hbm [shape: bf16[30,128], index: 5, kind: output, shape index: {0}]   ;;  %s2220_s6 = inlined_call_operand.hbm [shape: bf16[30,256], index: 6, kind: output, shape index: {1}]   ;;  %s2221_s7 = inlined_call_operand.hbm [shape: f32[2,1,256], index: 7, kind: output, shape index: {2}]   ;;  %s2222_s8 = inlined_call_operand.hbm [shape: f32[2,1,128], index: 8, kind: output, shape index: {3}]  }
   0x1   :  { %2226 = sst [smem:[#allocation22_spill]] %s2214_s0 }
   0x2   :  { %2227 = sst [smem:[#allocation23_spill]] %s2215_s1 }
   0x3   :  { %2228 = sst [smem:[#allocation24_spill]] %s2216_s2 }
   0x4   :  { %2229 = sst [smem:[#allocation25_spill]] %s2217_s3 }
   0x5   :  { %2230 = sst [smem:[#allocation26_spill]] %s2218_s4 }
   0x6   :  { %2231 = sst [smem:[#allocation27_spill]] %s2220_s6 }
   0x7   :  { %14 = vsyncpa [#allocation3], 0 }
   0x8   :  { %16 = vsyncpa [#allocation3 + $0x1], 0 }
   0x9   :  { %17 = vsyncpa [#allocation6], 0 }
   0xa   :  { %18 = vsyncpa [#allocation9], 0 }
   0xb   :  { %19 = vsyncpa [#allocation4], 0 }
   0xc   :  { %21 = vsyncpa [#allocation4 + $0x1], 0 }
   0xd   :  { %22 = vsyncpa [#allocation12], 0 }
   0xe   :  { %24 = vsyncpa [#allocation12 + $0x1], 0 }
   0xf   :  { %25 = vsyncpa [#allocation15], 0 }
  0x10   :  { %27 = vsyncpa [#allocation15 + $0x1], 0  ;;  %s1891_s27 = smov 0   ;;  %s1893_s28 = smov 0  }
  0x11   :  { %s1895_s29 = smov 0   ;;  %s1897_s30 = smov 0  }
  0x12 LB: > { %s1912_s9 = sadd.s32 4294967295, %s1830_s30   ;;  %s2223_s10 = sadd.s32 4294967294, %s1830_s30   ;;  %s1830_s30 = sphi %s1897_s30, %s2251_s30   ;;  %s1826_s29 = sphi %s1895_s29, %s2250_s29   ;;  %s1822_s28 = sphi %s1893_s28, %s2249_s28   ;;  %s1818_s27 = sphi %s1891_s27, %s2248_s27  }
  0x13   : > { %p53_p0 = scmp.ne.s32.totalorder %s1822_s28, %s1818_s27  ;;  %p54_p1 = scmp.eq.s32.totalorder %s1912_s9, 0 }
  0x14   : > { %p161_p2 = scmp.eq.s32.totalorder %s1912_s9, 1  ;;  %p167_p3 = scmp.eq.s32.totalorder %s2223_s10, 1 }
  0x15   : > { %p1923_p4 = por %p54_p1, %p53_p0  ;;  %p1215_p5 = scmp.ge.s32.totalorder %s1830_s30, 1 }
  0x16   : > { %p1928_p6 = por %p167_p3, %p53_p0  ;;  %p252_p7 = scmp.lt.s32.totalorder %s1830_s30, 3 }
  0x17   : > { %s2234_s1 = sld [smem:[#allocation23_spill]]  ;;  %s1832_s17 = smov [#allocation5]  }
  0x18   : > { %p1936_p8 = pnand %p1215_p5, %p252_p7  ;;  %s265_s18 = sshll.u32 %s1832_s17, 4  ;;  %s266_s18 = int_to_ptr.vmem [resolvable:$true] %s265_s18 }
  0x19   : > { %s2237_s2 = sld [smem:[#allocation24_spill]]  ;;  %s2224_s23 = smov 128  }
  0x1a   : > { %p1450_p9 = pneg %p1936_p8  ;;  %s2225_s24 = smov 8  }
  0x1b   : > { %s1835_s25 = smov [#allocation7]   ;;  %s2238_s3 = sld [smem:[#allocation25_spill]] }
  0x1c   : > { %p1944_p10 = pnand %p1450_p9, %p54_p1  ;;  %s280_s26 = sshll.u32 %s1835_s25, 4  ;;  %s281_s26 = int_to_ptr.vmem [resolvable:$true] %s280_s26 }
  0x1d   : > { %s263_s15 = sshll.u32 %s2234_s1, 4  ;;  %s1836_s20 = smov [#allocation8]   ;;  %s264_s15 = int_to_ptr.hbm [resolvable:$true] %s263_s15 }
  0x1e   : > { %1453 = dma.hbm_to_vmem [thread:$0]  (!%p1944_p10), %s264_s15, 2048, %s266_s18, [#allocation6], %s2224_s23, %s2224_s23, %s2225_s24  }
  0x1f   : > { %s278_s22 = sshll.u32 %s2237_s2, 4  ;;  %s291_s15 = sshll.u32 %s1836_s20, 4  ;;  %s279_s22 = int_to_ptr.hbm [resolvable:$true] %s278_s22  ;;  %s292_s15 = int_to_ptr.vmem [resolvable:$true] %s291_s15 }
  0x20   : > { %1456 = dma.hbm_to_vmem [thread:$0]  (!%p1944_p10), %s279_s22, 32, %s281_s26, [#allocation6]  }
  0x21   : > { %s289_s17 = sshll.u32 %s2238_s3, 4  ;;  %s1837_s18 = smov 64   ;;  %s290_s17 = int_to_ptr.hbm [resolvable:$true] %s289_s17 }
  0x22   : > { %s1838_s21 = smov 4   ;;  %s1965_s25 = sadd.s32 1, %s1830_s30  }
  0x23   : > { %1459 = dma.hbm_to_vmem [thread:$0]  (!%p1944_p10), %s290_s17, 2048, %s292_s15, [#allocation9], %s1837_s18, %s1837_s18, %s1838_s21  }
  0x24   : > { %s37_s13 = ssub.s32 %s1830_s30, %s1965_s25  ;;  %s40_s14 = sadd.s32 1, %s1826_s29 }
  0x25   : > { %p38_p12 = scmp.eq.s32.totalorder %s37_s13, 0  ;;  %p47_p13 = scmp.ne.s32.totalorder %s1826_s29, %s1822_s28 }
  0x26   : > { %p48_p0 = scmp.eq.s32.totalorder %s1830_s30, 0  ;;  %p1480_p5 = scmp.lt.s32.totalorder %s1830_s30, 2 }
  0x27   : > { %s1974_s10 = scalar_select %p38_p12, %s1826_s29, %s40_s14  }
  0x28   : > { %p1978_p3 = por %p161_p2, %p47_p13  ;;  %s308_s26 = sand.u32 1, %s1826_s29  }
  0x29   : > { %s1379_s20 = sshll.u32 %s1830_s30, 4  ;;  %p49_p7 = por %p48_p0, %p47_p13 }
  0x2a   : > { %s1220_s19 = sshll.u32 %s308_s26, 4  ;;  %s2240_s0 = sld [smem:[#allocation22_spill]] }
  0x2b   : > { %s312_s13 = scalar_lea.vmem [#allocation2], %s1220_s19  ;;  %p1988_p9 = pnand %p1480_p5, %p49_p7 }
  0x2c   : > { %s320_s23 = sshll.u32 %s312_s13, 4  ;;  %s309_s24 = scalar_lea.sflag [#allocation3], %s308_s26  ;;  %s321_s23 = int_to_ptr.vmem [resolvable:$true] %s320_s23 }
  0x2d   : > { %p1638_p10 = pneg %p1988_p9 }
  0x30   : > { %s317_s18 = scalar_lea.hbm %s2240_s0, %s1379_s20  ;;  %s1641_s19 = scalar_lea.hbm %s2240_s0, 32 }
  0x31   : > { %s318_s21 = sshll.u32 %s317_s18, 4  ;;  %s319_s21 = int_to_ptr.hbm [resolvable:$true] %s318_s21 }
  0x32   : > { %s1634_s1 = sshra.s32 %s319_s21, 4  ;;  %s1635_s1 = int_to_ptr.hbm [resolvable:$true] %s1634_s1 }
  0x33   : > { %s1636_s2 = scalar_lea.hbm %s1635_s1, 16  ;;  %p1642_p0 = scmp.lt.s32.totalorder %s1635_s1, %s2240_s0 }
  0x34   : > { %p1637_p2 = scmp.ne.s32.totalorder %s1635_s1, %s1636_s2  ;;  %p1643_p5 = scmp.lt.s32.totalorder %s1641_s19, %s1636_s2 }
  0x36   : > { %p1639_p12 = pnand %p1638_p10, %p1637_p2  ;;  %p1644_p7 = por %p1643_p5, %p1642_p0 }
  0x38   : > { %p1640_p13 = pneg %p1639_p12 }
  0x3a   : > { %p1645_p11 = pnand %p1644_p7, %p1640_p13 }
  0x3c   : > { %1648 = shalt.err (!%p1645_p11)
}
  0x3d   : > { %s2242_s26 = smov 8   ;;  %s2243_s13 = smov 128  }
  0x3e   : > { %1463 = dma.hbm_to_vmem [thread:$0]  (!%p1988_p9), %s319_s21, 256, %s321_s23, %s309_s24, %s2243_s13, %s2243_s13, %s2242_s26  }
  0x3f   : > { %332 = sbr.rel (%p1936_p8) target bundleno = 965 (0x3c5), region = 40  ;;  %s2008_s20 = sand.u32 (!%p1936_p8), 1, %s1822_s28  }
  0x40   : > { %s1224_s1 = sshll.u32 (!%p1936_p8), %s2008_s20, 4  ;;  %s335_s2 = scalar_lea.sflag (!%p1936_p8), [#allocation3], %s2008_s20 }
  0x41   : > { %s338_s17 = scalar_lea.vmem (!%p1936_p8), [#allocation2], %s1224_s1 }
  0x44   : > { %1793 = dma.done.wait (%p1923_p4), %s335_s2, 256  }
  0x45   : > { %1795 = vsyncadd (%p1923_p4), %s335_s2, 4294967040 }
  0x46   : > { %1797 = dma.done.wait (%p54_p1), [#allocation6], 2080  }
  0x47   : > { %1799 = vsyncadd (%p54_p1), [#allocation6], 4294965216 }
  0x48   : > { %1801 = dma.done.wait (%p54_p1), [#allocation9], 2048  }
  0x49   : > { %1803 = vsyncadd (%p54_p1), [#allocation9], 4294965248  ;;  %v404_v0 = vld [vmem:[%s338_s17] sm:$0xff]  ;;  %v405_v1 = vld [vmem:[%s338_s17 + $0x8] sm:$0xff]  ;;  %v1839_v2 = vmov 128.0   ;;  %v1840_v17 = vmov 127.0  }
  0x4a   : > { %406 = vadd.xlane.f32.xlu0 %v404_v0  ;;  %1532 = vrcp.f32 %v1839_v2  ;;  %v1289_v20 = vld [vmem:[#allocation5 + $0x70] sm:$0xf]  ;;  %v1395_v21 = vld [vmem:[#allocation5 + $0x74] sm:$0xf0]  ;;  %v1394_v22 = vld [vmem:[#allocation5 + $0x74] sm:$0xf] }
  0x4b   : > { %1534 = vrcp.f32 %v1840_v17  ;;  %v1290_v23 = vor.u32 %v1395_v21, %v1289_v20  ;;  %v1291_v24 = vld [vmem:[#allocation5 + $0x78] sm:$0xf0]  ;;  %v1281_v27 = vld [vmem:[#allocation5 + $0x60] sm:$0xf]  ;;  %v1393_v28 = vld [vmem:[#allocation5 + $0x64] sm:$0xf0] }
  0x4c   : > { %v1294_v25 = vor.u32 %v1394_v22, %v1291_v24  ;;  %v1392_v29 = vld [vmem:[#allocation5 + $0x64] sm:$0xf]  ;;  %v1282_v30 = vor.u32 %v1393_v28, %v1281_v27  ;;  %v1283_v31 = vld [vmem:[#allocation5 + $0x68] sm:$0xf0]  ;;  %v1273_v32 = vld [vmem:[#allocation5 + $0x50] sm:$0xf] }
  0x4d   : > { %575 = vmatpush.bf16.msra.mxu0 %v1290_v23  ;;  %v1391_v33 = vld [vmem:[#allocation5 + $0x54] sm:$0xf0]  ;;  %v1286_v34 = vor.u32 %v1392_v29, %v1283_v31  ;;  %v1390_v35 = vld [vmem:[#allocation5 + $0x54] sm:$0xf]  ;;  %v1275_v36 = vld [vmem:[#allocation5 + $0x58] sm:$0xf0] }
  0x4e   : > { %589 = vmatpush.bf16.msra.mxu1 %v1294_v25  ;;  %v1274_v37 = vor.u32 %v1391_v33, %v1273_v32  ;;  %v1278_v38 = vor.u32 %v1390_v35, %v1275_v36  ;;  %v1265_v39 = vld [vmem:[#allocation5 + $0x40] sm:$0xf]  ;;  %v1389_v40 = vld [vmem:[#allocation5 + $0x44] sm:$0xf0]  ;;  %v1388_v42 = vld [vmem:[#allocation5 + $0x44] sm:$0xf] }
  0x4f   : > { %v1267_v43 = vld [vmem:[#allocation5 + $0x48] sm:$0xf0]  ;;  %v1266_v44 = vor.u32 %v1389_v40, %v1265_v39  ;;  %v1257_v46 = vld [vmem:[#allocation5 + $0x30] sm:$0xf]  ;;  %v1387_v47 = vld [vmem:[#allocation5 + $0x34] sm:$0xf0] }
  0x50   : > { %v1533_v3 = vpop.eup %1532  ;;  %v1270_v45 = vor.u32 %v1388_v42, %v1267_v43  ;;  %v1386_v49 = vld [vmem:[#allocation5 + $0x34] sm:$0xf]  ;;  %v1259_v50 = vld [vmem:[#allocation5 + $0x38] sm:$0xf0]  ;;  %v1258_v51 = vor.u32 %v1387_v47, %v1257_v46  ;;  %v1249_v53 = vld [vmem:[#allocation5 + $0x20] sm:$0xf] }
  0x51   : > { %v411_v4 = vmul.f32 128.0, %v1533_v3  ;;  %vm415_vm0 = vweird.f32 %v1533_v3  ;;  %v1535_v18 = vpop.eup %1534  ;;  %576 = vmatpush.bf16.msra.mxu0 %v1282_v30  ;;  %v1262_v52 = vor.u32 %v1386_v49, %v1259_v50  ;;  %v1385_v54 = vld [vmem:[#allocation5 + $0x24] sm:$0xf0]  ;;  %v1384_v56 = vld [vmem:[#allocation5 + $0x24] sm:$0xf]  ;;  %v1403_v20 = vld [vmem:[#allocation8 + $0x38] sm:$0xff] }
  0x52   : > { %408 = vadd.xlane.f32.xlu0 %v405_v1  ;;  %v428_v19 = vmul.f32 127.0, %v1535_v18  ;;  %590 = vmatpush.bf16.msra.mxu1 %v1286_v34  ;;  %vm432_vm1 = vweird.f32 %v1535_v18  ;;  %v1251_v57 = vld [vmem:[#allocation5 + $0x28] sm:$0xf0]  ;;  %v1250_v59 = vor.u32 %v1385_v54, %v1249_v53  ;;  %v1241_v62 = vld [vmem:[#allocation5 + $0x10] sm:$0xf]  ;;  %v1411_v21 = vld [vmem:[#allocation8 + $0x78] sm:$0xff] }
  0x53   : > { %v412_v5 = vsub.f32 1.0, %v411_v4  ;;  %v1254_v61 = vor.u32 %v1384_v56, %v1251_v57  ;;  %v1383_v63 = vld [vmem:[#allocation5 + $0x14] sm:$0xf0]  ;;  %v1233_v4 = vld [vmem:[#allocation5] sm:$0xf]  ;;  %747 = vmatpush.bf16.msra.mxu2 %v1403_v20  ;;  %761 = vmatpush.bf16.msra.mxu3 %v1411_v21  ;;  %v1401_v31 = vld [vmem:[#allocation8 + $0x28] sm:$0xff] }
  0x54   : > { %v429_v26 = vsub.f32 1.0, %v428_v19  ;;  %v1242_v2 = vor.u32 %v1383_v63, %v1241_v62  ;;  %v1402_v24 = vld [vmem:[#allocation8 + $0x30] sm:$0xff]  ;;  %v1409_v32 = vld [vmem:[#allocation8 + $0x68] sm:$0xff]  ;;  %s2244_s4 = sld [smem:[#allocation26_spill]]  ;;  %v1399_v53 = vld [vmem:[#allocation8 + $0x18] sm:$0xff]  ;;  %v786_v63 = vlaneseq  ;;  %s1359_s23 = sshll.u32 %s1912_s9, 4 }
  0x55   : > { %v413_v6 = vmul.f32 %v1533_v3, %v412_v5  ;;  %577 = vmatpush.bf16.msra.mxu0 %v1274_v37  ;;  %v1381_v5 = vld [vmem:[#allocation5 + $0x4] sm:$0xf0]  ;;  %v1410_v25 = vld [vmem:[#allocation8 + $0x70] sm:$0xff]  ;;  %v1407_v54 = vld [vmem:[#allocation8 + $0x58] sm:$0xff]  ;;  %s2069_s24 = scalar_lea.vmem [#allocation11], %s1224_s1  ;;  %s1230_s21 = sshll.u32 %s2008_s20, 1 }
  0x56   : > { %v430_v41 = vmul.f32 %v1535_v18, %v429_v26  ;;  %591 = vmatpush.bf16.msra.mxu1 %v1278_v38  ;;  %v1397_v56 = vld [vmem:[#allocation8 + $0x8] sm:$0xff]  ;;  %s2089_s14 = scalar_lea.vmem [#allocation13], %s1230_s21  ;;  %s1228_s19 = sshll.u32 %s2008_s20, 3 }
  0x57   : > { %v414_v7 = vadd.f32 %v1533_v3, %v413_v6  ;;  %v1380_v6 = vld [vmem:[#allocation5 + $0x4] sm:$0xf]  ;;  %748 = vmatpush.bf16.msra.mxu2 %v1402_v24  ;;  %762 = vmatpush.bf16.msra.mxu3 %v1410_v25  ;;  %v1405_v57 = vld [vmem:[#allocation8 + $0x48] sm:$0xff]  ;;  %s2107_s15 = scalar_lea.vmem [#allocation10], %s1228_s19  ;;  %s2245_s6 = sld [smem:[#allocation27_spill]] }
  0x58   : > { %v431_v48 = vadd.f32 %v1535_v18, %v430_v41  ;;  %s951_s2 = sand.u32 1, %s1912_s9   ;;  %s991_s17 = sshll.u32 %s2069_s24, 4  ;;  %s992_s17 = int_to_ptr.vmem [resolvable:$true] %s991_s17 }
  0x59   : > { %v416_v8 = vsel %vm415_vm0, %v1533_v3, %v414_v7  ;;  %578 = vmatpush.bf16.msra.mxu0 %v1266_v44  ;;  %v1235_v7 = vld [vmem:[#allocation5 + $0x8] sm:$0xf0]  ;;  %vm869_vm0 = vcmask 1040384   ;;  %s2132_s11 = scalar_lea.sflag [#allocation12], %s951_s2 }
  0x5a   : > { %592 = vmatpush.bf16.msra.mxu1 %v1270_v45  ;;  %v433_v55 = vsel %vm432_vm1, %v1535_v18, %v431_v48  ;;  %v2052_v46 = vld [vmem:[%s2244_s4] ss:$0 sm:$0xff]  ;;  %vm874_vm1 = vcmp.lt.s32.totalorder %v786_v63, 256 }
  0x5b   : > { %749 = vmatpush.bf16.msra.mxu2 %v1401_v31  ;;  %763 = vmatpush.bf16.msra.mxu3 %v1409_v32 }
  0x5d   : > { %579 = vmatpush.bf16.msra.mxu0 %v1258_v51  ;;  %s990_s13 = scalar_lea.hbm %s2245_s6, %s1359_s23  ;;  %s1684_s3 = scalar_lea.hbm %s2245_s6, 32 }
  0x5e   : > { %593 = vmatpush.bf16.msra.mxu1 %v1262_v52  ;;  %v1408_v52 = vld [vmem:[#allocation8 + $0x60] sm:$0xff]  ;;  %s993_s1 = sshll.u32 %s990_s13, 4  ;;  %s994_s1 = int_to_ptr.hbm [resolvable:$true] %s993_s1 }
  0x5f   : > { %764 = vmatpush.bf16.msra.mxu3 %v1408_v52  ;;  %s1678_s16 = sshra.s32 %s994_s1, 4  ;;  %s1679_s16 = int_to_ptr.hbm [resolvable:$true] %s1678_s16 }
  0x60   : > { %s1680_s21 = scalar_lea.hbm %s1679_s16, 16  ;;  %p1685_p11 = scmp.lt.s32.totalorder %s1679_s16, %s2245_s6 }
  0x61   : > { %580 = vmatpush.bf16.msra.mxu0 %v1250_v59  ;;  %v1404_v59 = vld [vmem:[#allocation8 + $0x40] sm:$0xff]  ;;  %p1681_p1 = scmp.ne.s32.totalorder %s1679_s16, %s1680_s21  ;;  %p1686_p9 = scmp.lt.s32.totalorder %s1684_s3, %s1680_s21 }
  0x62   : > { %594 = vmatpush.bf16.msra.mxu1 %v1254_v61 }
  0x63   : > { %765 = vmatpush.bf16.msra.mxu3 %v1407_v54  ;;  %p1682_p4 = pnand %p1681_p1, %p1978_p3  ;;  %p1687_p2 = por %p1686_p9, %p1685_p11 }
  0x65   : > { %581 = vmatpush.bf16.msra.mxu0 %v1242_v2  ;;  %p1683_p8 = pneg %p1682_p4 }
  0x67   : > { %p1688_p10 = pnand %p1687_p2, %p1683_p8 }
  0xbd   : > { %v407_v9 = vpop.xlane.xlu0 %406 }
  0xbe   : > { %v2026_v10 = vmul.f32 %v416_v8, %v407_v9  ;;  %v1234_v9 = vor.u32 %v1381_v5, %v1233_v4  ;;  %v787_v4 = vshrl.u32 %v786_v63, 7  ;;  %v789_v5 = vstv %s1359_s23 }
  0xc0   : > { %v2029_v11 = vsub.f32 %v404_v0, %v2026_v10  ;;  %v1382_v0 = vld [vmem:[#allocation5 + $0x14] sm:$0xf]  ;;  %582 = vmatpush.bf16.msra.mxu0 %v1234_v9 }
  0xc2   : > { %v421_v12 = vmul.f32 %v2029_v11, %v2029_v11 }
  0xc4   : > { %423 = vadd.xlane.f32.xlu1 %v421_v12 }
  0xc5   : > { %v409_v13 = vpop.xlane.xlu0 %408 }
  0xc6   : > { %v2033_v14 = vmul.f32 %v416_v8, %v409_v13 }
  0xc8   : > { %v2036_v15 = vsub.f32 %v405_v1, %v2033_v14  ;;  %v1243_v1 = vld [vmem:[#allocation5 + $0x18] sm:$0xf0] }
  0xc9   : > { %v1246_v3 = vor.u32 %v1382_v0, %v1243_v1 }
  0xca   : > { %v422_v16 = vmul.f32 %v2036_v15, %v2036_v15 }
  0xcb   : > { %595 = vmatpush.bf16.msra.mxu1 %v1246_v3 }
  0xcc   : > { %425 = vadd.xlane.f32.xlu1 %v422_v16  ;;  %v1238_v16 = vor.u32 %v1380_v6, %v1235_v7 }
  0xcf   : > { %596 = vmatpush.bf16.msra.mxu1 %v1238_v16 }
 0x137   : > { %v424_v58 = vpop.xlane.xlu1 %423 }
 0x138   : > { %v434_v60 = vmul.f32 %v433_v55, %v424_v58  ;;  %v1396_v58 = vld [vmem:[#allocation8] sm:$0xff] }
 0x13a   : > { %1536 = vrsqrt.f32 %v434_v60  ;;  %vm443_vm2 = vcmp.eq.f32.partialorder %v434_v60, inf  ;;  %v446_v30 = vand.u32 2147483648, %v434_v60  ;;  %vm445_vm3 = vcmp.eq.f32.partialorder %v434_v60, 0.0 }
 0x13f   : > { %v426_v8 = vpop.xlane.xlu1 %425 }
 0x140   : > { %v1537_v12 = vpop.eup %1536  ;;  %v435_v13 = vmul.f32 %v433_v55, %v426_v8  ;;  %v1398_v55 = vld [vmem:[#allocation8 + $0x10] sm:$0xff]  ;;  %v788_v8 = vadd.s32 8, %v787_v4 }
 0x141   : > { %v437_v17 = vmul.f32 %v1537_v12, %v434_v60 }
 0x142   : > { %1538 = vrsqrt.f32 %v435_v13  ;;  %vm455_vm4 = vcmp.eq.f32.partialorder %v435_v13, inf  ;;  %v458_v40 = vand.u32 2147483648, %v435_v13  ;;  %vm457_vm5 = vcmp.eq.f32.partialorder %v435_v13, 0.0 }
 0x143   : > { %v438_v18 = vmul.f32 %v1537_v12, %v437_v17  ;;  %v2072_v21 = vadd.s32 %v789_v5, %v788_v8 }
 0x145   : > { %v439_v19 = vmul.f32 0.5, %v438_v18  ;;  %vm793_vm11 = vcmp.lt.s32.totalorder %v2072_v21, 30 }
 0x147   : > { %v440_v22 = vsub.f32 1.5, %v439_v19 }
 0x148   : > { %v1539_v23 = vpop.eup %1538 }
 0x149   : > { %v449_v26 = vmul.f32 %v1539_v23, %v435_v13  ;;  %v441_v27 = vmul.f32 %v1537_v12, %v440_v22  ;;  %v2065_v12 = vadd.s32 %v789_v5, %v787_v4 }
 0x14b   : > { %v442_v28 = vmul.f32 %v441_v27, %v434_v60  ;;  %v450_v29 = vmul.f32 %v1539_v23, %v449_v26  ;;  %vm792_vm10 = vcmp.lt.s32.totalorder %v2065_v12, 30 }
 0x14d   : > { %v444_v33 = vsel %vm443_vm2, %v434_v60, %v442_v28  ;;  %v451_v34 = vmul.f32 0.5, %v450_v29  ;;  %v467_v60 = vld [vmem:[#allocation7] sm:$0x3]  ;;  %vm880_vm2 = vcmask 7168  }
 0x14e   : > { %v2040_v35 = vsel %vm445_vm3, %v446_v30, %v444_v33  ;;  %v491_v61 = vperm.slane %v467_v60, 0  ;;  %v492_v62 = vperm.slane %v467_v60, 1 }
 0x14f   : > { %v452_v36 = vsub.f32 1.5, %v451_v34  ;;  %v460_v38 = vadd.f32 1e-05, %v2040_v35 }
 0x151   : > { %v453_v37 = vmul.f32 %v1539_v23, %v452_v36  ;;  %1540 = vrcp.f32 %v460_v38 }
 0x153   : > { %v454_v39 = vmul.f32 %v453_v37, %v435_v13 }
 0x155   : > { %v456_v41 = vsel %vm455_vm4, %v435_v13, %v454_v39  ;;  %v1841_v13 = vmov 0.0  }
 0x156   : > { %v2043_v42 = vsel %vm457_vm5, %v458_v40, %v456_v41 }
 0x157   : > { %v461_v43 = vadd.f32 1e-05, %v2043_v42  ;;  %v1541_v44 = vpop.eup %1540 }
 0x158   : > { %v2047_v45 = vmul.f32 %v1541_v44, %v2029_v11  ;;  %v1400_v11 = vld [vmem:[#allocation8 + $0x20] sm:$0xff] }
 0x159   : > { %1542 = vrcp.f32 %v461_v43  ;;  %750 = vmatpush.bf16.msra.mxu2 %v1400_v11 }
 0x15a   : > { %v471_v49 = vsub.f32 %v2047_v45, %v2052_v46 }
 0x15d   : > { %751 = vmatpush.bf16.msra.mxu2 %v1399_v53 }
 0x15f   : > { %v1543_v47 = vpop.eup %1542 }
 0x160   : > { %v2055_v48 = vmul.f32 %v1543_v47, %v2036_v15  ;;  %v1406_v15 = vld [vmem:[#allocation8 + $0x50] sm:$0xff] }
 0x161   : > { %752 = vmatpush.bf16.msra.mxu2 %v1398_v55  ;;  %766 = vmatpush.bf16.msra.mxu3 %v1406_v15 }
 0x162   : > { %v472_v50 = vsub.f32 %v2055_v48, %v2052_v46 }
 0x164   : > { %v473_v51 = vpack.c.bf16 %v472_v50, %v471_v49 }
 0x165   : > { %753 = vmatpush.bf16.msra.mxu2 %v1397_v56  ;;  %767 = vmatpush.bf16.msra.mxu3 %v1405_v57 }
 0x166   : > { %583 = vmatmul.bf16.vlgmr.msra.gmra.mxu0 %v473_v51  ;;  %597 = vmatmul.bf16.vlgmr.msra.gmra.mxu1 %v473_v51 }
 0x169   : > { %754 = vmatpush.bf16.msra.mxu2 %v1396_v58  ;;  %768 = vmatpush.bf16.msra.mxu3 %v1404_v59 }
 0x1e3   : > { %v584_v0 = vpop.f32.mrf.mxu0  ;;  %v598_v1 = vpop.f32.mrf.mxu1 }
 0x1e4   : > { %v585_v2 = vadd.f32 %v584_v0, %v491_v61  ;;  %v599_v3 = vadd.f32 %v598_v1, %v492_v62 }
 0x1e6   : > { %v603_v6 = vmax.f32 %v585_v2, 0.0  ;;  %v604_v7 = vmax.f32 %v599_v3, 0.0 }
 0x1e8   : > { %vm804_vm6 = vcmp.gt.f32.partialorder %v603_v6, 0.0  ;;  %vm805_vm7 = vcmp.gt.f32.partialorder %v604_v7, 0.0  ;;  %v607_v9 = vpack.c.bf16 %v604_v7, %v603_v6  ;;  %vm824_vm8 = vcmp.gt.f32.partialorder %v603_v6, 0.01 }
 0x1e9   : > { %v1360_v16 = vsel %vm804_vm6, 1.0, %v1841_v13  ;;  %v1361_v17 = vsel %vm805_vm7, 1.0, %v1841_v13  ;;  %vm825_vm9 = vcmp.gt.f32.partialorder %v604_v7, 0.01  ;;  %v1364_v22 = vsel %vm824_vm8, 1.0, %v1841_v13 }
 0x1ea   : > { %v816_v18 = vadd.f32 %v1361_v17, %v1360_v16  ;;  %783 = vst [vmem:[%s2069_s24] sm:$0xff] %v607_v9  ;;  %v1365_v23 = vsel %vm825_vm9, 1.0, %v1841_v13  ;;  %v848_v29 = vsel %vm792_vm10, %v603_v6, 0.0  ;;  %v643_v39 = vunpack.c.l.b16 %v607_v9 }
 0x1eb   : > { %v586_v19 = vpop.f32.mrf.mxu0  ;;  %v600_v20 = vpop.f32.mrf.mxu1  ;;  %v2075_v26 = vadd.f32 %v1365_v23, %v1364_v22  ;;  %v849_v40 = vsel %vm792_vm10, %v604_v7, 0.0  ;;  %v644_v47 = vunpack.c.h.b16 %v607_v9 }
 0x1ec   : > { %v587_v24 = vadd.f32 %v586_v19, %v491_v61  ;;  %v601_v25 = vadd.f32 %v600_v20, %v492_v62  ;;  %817 = vadd.xlane.f32.xlu0 %v816_v18 }
 0x1ee   : > { %v605_v27 = vmax.f32 %v587_v24, 0.0  ;;  %v606_v28 = vmax.f32 %v601_v25, 0.0 }
 0x1f0   : > { %vm806_vm12 = vcmp.gt.f32.partialorder %v605_v27, 0.0  ;;  %vm807_vm13 = vcmp.gt.f32.partialorder %v606_v28, 0.0  ;;  %vm826_vm14 = vcmp.gt.f32.partialorder %v605_v27, 0.01  ;;  %vm827_vm15 = vcmp.gt.f32.partialorder %v606_v28, 0.01 }
 0x1f1   : > { %v1362_v30 = vsel %vm806_vm12, 1.0, %v1841_v13  ;;  %v1363_v31 = vsel %vm807_vm13, 1.0, %v1841_v13  ;;  %v1366_v32 = vsel %vm826_vm14, 1.0, %v1841_v13  ;;  %v1367_v33 = vsel %vm827_vm15, 1.0, %v1841_v13 }
 0x1f2   : > { %v819_v34 = vadd.f32 %v1363_v31, %v1362_v30  ;;  %v839_v36 = vadd.f32 %v1367_v33, %v1366_v32  ;;  %v608_v37 = vpack.c.bf16 %v606_v28, %v605_v27  ;;  %v850_v38 = vsel %vm793_vm11, %v605_v27, 0.0 }
 0x1f3   : > { %v851_v41 = vsel %vm793_vm11, %v606_v28, 0.0  ;;  %v852_v43 = vadd.f32 %v850_v38, %v848_v29 }
 0x1f4   : > { %820 = vadd.xlane.f32.xlu1 %v819_v34  ;;  %840 = vadd.xlane.f32.xlu0 %v839_v36  ;;  %v645_v44 = vunpack.c.l.b16 %v608_v37  ;;  %784 = vst [vmem:[%s2069_s24 + $0x8] sm:$0xff] %v608_v37  ;;  %v646_v49 = vunpack.c.h.b16 %v608_v37  ;;  %v859_v50 = vadd.f32 %v851_v41, %v849_v40 }
 0x1f5   : > { %v853_v51 = vrot.slane %v852_v43, 4 }
 0x1f6   : > { %v647_v11 = vpack.c.b16 %v645_v44, %v643_v39  ;;  %v648_v52 = vpack.c.b16 %v646_v49, %v644_v47  ;;  %v860_v53 = vrot.slane %v859_v50, 4 }
 0x1f7   : > { %v854_v54 = vadd.f32 %v853_v51, %v852_v43 }
 0x1f8   : > { %755 = vmatmul.bf16.vlgmr.msra.gmra.mxu2 %v647_v11  ;;  %769 = vmatmul.bf16.vlgmr.msra.gmra.mxu3 %v648_v52  ;;  %v861_v55 = vadd.f32 %v860_v53, %v859_v50 }
 0x1f9   : > { %v855_v15 = vrot.slane %v854_v54, 2 }
 0x1fa   : > { %v862_v56 = vrot.slane %v861_v55, 2 }
 0x1fb   : > { %v856_v57 = vadd.f32 %v855_v15, %v854_v54 }
 0x1fc   : > { %v863_v58 = vadd.f32 %v862_v56, %v861_v55 }
 0x1fd   : > { %v857_v59 = vrot.slane %v856_v57, 1 }
 0x1fe   : > { %v864_v60 = vrot.slane %v863_v58, 1 }
 0x1ff   : > { %v858_v62 = vadd.f32 %v857_v59, %v856_v57 }
 0x200   : > { %v865_v61 = vadd.f32 %v864_v60, %v863_v58 }
 0x202   : > { %v868_v0 = vrot.slane %v865_v61, 7 }
 0x204   : > { %v870_v1 = vsel %vm869_vm0, %v858_v62, %v868_v0 }
 0x205   : > { %876 = vst.msk [vmem:[%s2089_s14] sm:$0x3] %vm874_vm1, %v870_v1 }
 0x25f   : > { %v818_v2 = vpop.xlane.xlu0 %817 }
 0x260   : > { %v822_v3 = vsel %vm792_vm10, %v818_v2, 0.0 }
 0x261   : > { %v912_v4 = vmul.f32 %v822_v3, %v822_v3 }
 0x263   : > { %v914_v8 = vsel %vm880_vm2, %v912_v4, 0.0 }
 0x267   : > { %v821_v5 = vpop.xlane.xlu1 %820  ;;  %v841_v38 = vpop.xlane.xlu0 %840 }
 0x268   : > { %v823_v6 = vsel %vm793_vm11, %v821_v5, 0.0  ;;  %v843_v39 = vsel %vm793_vm11, %v841_v38, 0.0 }
 0x269   : > { %v913_v7 = vmul.f32 %v823_v6, %v823_v6  ;;  %v931_v43 = vsel %vm880_vm2, %v843_v39, 0.0 }
 0x26b   : > { %v915_v9 = vsel %vm880_vm2, %v913_v7, 0.0 }
 0x26c   : > { %v916_v13 = vadd.f32 %v915_v9, %v914_v8 }
 0x26e   : > { %917 = vadd.xlane.f32.xlu0 %v916_v13 }
 0x27b   : > { %v756_v16 = vpop.f32.mrf.mxu2  ;;  %v770_v17 = vpop.f32.mrf.mxu3 }
 0x27c   : > { %v757_v18 = vadd.f32 %v2052_v46, %v756_v16 }
 0x27e   : > { %v771_v19 = vadd.f32 %v770_v17, %v757_v18 }
 0x280   : > { %v794_v20 = vsub.f32 %v771_v19, %v2047_v45  ;;  %v775_v27 = vmul.f32 %v771_v19, %v2040_v35  ;;  %v897_v35 = vsel %vm880_vm2, %v823_v6, 0.0 }
 0x282   : > { %v796_v22 = vmul.f32 %v794_v20, %v794_v20  ;;  %v777_v31 = vadd.f32 %v775_v27, %v2026_v10 }
 0x283   : > { %v758_v23 = vpop.f32.mrf.mxu2  ;;  %v772_v25 = vpop.f32.mrf.mxu3 }
 0x284   : > { %v759_v24 = vadd.f32 %v2052_v46, %v758_v23  ;;  %798 = vadd.xlane.f32.xlu2 %v796_v22  ;;  %v896_v46 = vsel %vm880_vm2, %v822_v3, 0.0 }
 0x286   : > { %v773_v28 = vadd.f32 %v772_v25, %v759_v24 }
 0x288   : > { %v776_v29 = vmul.f32 %v773_v28, %v2043_v42  ;;  %v795_v30 = vsub.f32 %v773_v28, %v2055_v48  ;;  %v898_v42 = vadd.f32 %v897_v35, %v896_v46 }
 0x28a   : > { %v778_v32 = vadd.f32 %v776_v29, %v2033_v14  ;;  %v797_v33 = vmul.f32 %v795_v30, %v795_v30 }
 0x28c   : > { %v1418_v45 = vpack.c.bf16 %v778_v32, %v777_v31  ;;  %800 = vadd.xlane.f32.xlu2 %v797_v33 }
 0x28e   : > { %1419 = vst [vmem:[%s2107_s15] sm:$0xff] %v1418_v45  }
 0x294   : > { %837 = vadd.xlane.f32.xlu2 %v2075_v26 }
 0x29c   : > { %899 = vadd.xlane.f32.xlu2 %v898_v42 }
 0x2f7   : > { %v799_v48 = vpop.xlane.xlu2 %798 }
 0x2f8   : > { %v802_v10 = vsel %vm792_vm10, %v799_v48, 0.0 }
 0x2f9   : > { %v881_v36 = vsel %vm880_vm2, %v802_v10, 0.0 }
 0x2ff   : > { %v801_v14 = vpop.xlane.xlu2 %800 }
 0x300   : > { %v803_v34 = vsel %vm793_vm11, %v801_v14, 0.0 }
 0x301   : > { %v882_v26 = vsel %vm880_vm2, %v803_v34, 0.0 }
 0x302   : > { %v883_v37 = vadd.f32 %v882_v26, %v881_v36 }
 0x304   : > { %884 = vadd.xlane.f32.xlu1 %v883_v37 }
 0x307   : > { %v838_v40 = vpop.xlane.xlu2 %837 }
 0x308   : > { %v842_v41 = vsel %vm792_vm10, %v838_v40, 0.0 }
 0x309   : > { %v930_v44 = vsel %vm880_vm2, %v842_v41, 0.0 }
 0x30a   : > { %v932_v47 = vadd.f32 %v931_v43, %v930_v44 }
 0x30c   : > { %933 = vadd.xlane.f32.xlu1 %v932_v47 }
 0x30d   : > { %1691 = shalt.err (!%p1688_p10)
}
 0x30e   : > { %s1842_s24 = smov 128   ;;  %s1843_s26 = smov 8  }
 0x30f   : > { %1443 = dma.vmem_to_hbm [thread:$0]  (%p1978_p3), %s992_s17, 256, %s994_s1, %s2132_s11, %s1842_s24, %s1842_s24, %s1843_s26  }
 0x310   : > { %s1412_s0 = sshll.u32 %s1912_s9, 3  ;;  %s973_s3 = sshll.u32 %s2107_s15, 4  ;;  %s974_s3 = int_to_ptr.vmem [resolvable:$true] %s973_s3 }
 0x311   : > { %s972_s16 = scalar_lea.hbm %s2219_s5, %s1412_s0  ;;  %s1376_s19 = sshll.u32 %s1912_s9, 1 }
 0x312   : > { %s975_s21 = sshll.u32 %s972_s16, 4  ;;  %s947_s18 = scalar_lea.sflag [#allocation4], %s2008_s20  ;;  %s976_s21 = int_to_ptr.hbm [resolvable:$true] %s975_s21 }
 0x313   : > { %s1706_s23 = sshra.s32 %s976_s21, 4  ;;  %s1712_s17 = scalar_lea.hbm %s2219_s5, 16  ;;  %s1707_s23 = int_to_ptr.hbm [resolvable:$true] %s1706_s23 }
 0x314   : > { %s1708_s4 = scalar_lea.hbm %s1707_s23, 8  ;;  %p1713_p5 = scmp.lt.s32.totalorder %s1707_s23, %s2219_s5 }
 0x315   : > { %p1709_p12 = scmp.ne.s32.totalorder %s1707_s23, %s1708_s4  ;;  %p1714_p7 = scmp.lt.s32.totalorder %s1712_s17, %s1708_s4 }
 0x317   : > { %p1710_p13 = pnand %p1709_p12, %p1978_p3  ;;  %p1715_p1 = por %p1714_p7, %p1713_p5 }
 0x319   : > { %p1711_p0 = pneg %p1710_p13 }
 0x31b   : > { %p1716_p4 = pnand %p1715_p1, %p1711_p0 }
 0x31d   : > { %1719 = shalt.err (!%p1716_p4)
}
 0x31e   : > { %s1844_s15 = smov 64   ;;  %s1845_s0 = smov 4  }
 0x31f   : > { %1442 = dma.vmem_to_hbm [thread:$0]  (%p1978_p3), %s974_s3, 128, %s976_s21, %s947_s18, %s1844_s15, %s1844_s15, %s1845_s0  }
 0x320   : > { %s1006_s6 = scalar_lea.hbm %s2221_s7, %s1376_s19  ;;  %s1008_s16 = sshll.u32 %s2089_s14, 4  ;;  %s1009_s16 = int_to_ptr.vmem [resolvable:$true] %s1008_s16 }
 0x321   : > { %s1010_s1 = sshll.u32 %s1006_s6, 4  ;;  %s1740_s26 = scalar_lea.hbm %s2221_s7, 4  ;;  %s1011_s1 = int_to_ptr.hbm [resolvable:$true] %s1010_s1 }
 0x322   : > { %s1734_s23 = sshra.s32 %s1011_s1, 4  ;;  %s1735_s23 = int_to_ptr.hbm [resolvable:$true] %s1734_s23 }
 0x323   : > { %s1736_s4 = scalar_lea.hbm %s1735_s23, 2  ;;  %p1741_p2 = scmp.lt.s32.totalorder %s1735_s23, %s2221_s7 }
 0x324   : > { %p1737_p8 = scmp.ne.s32.totalorder %s1735_s23, %s1736_s4  ;;  %p1742_p10 = scmp.lt.s32.totalorder %s1740_s26, %s1736_s4 }
 0x326   : > { %p1738_p11 = pnand %p1737_p8, %p1978_p3  ;;  %p1743_p12 = por %p1742_p10, %p1741_p2 }
 0x328   : > { %p1739_p9 = pneg %p1738_p11 }
 0x32a   : > { %p1744_p13 = pnand %p1743_p12, %p1739_p9 }
 0x32c   : > { %1747 = shalt.err (!%p1744_p13)
}
 0x32d   : > { %1444 = dma.vmem_to_hbm [thread:$0]  (%p1978_p3), %s1009_s16, 32, %s1011_s1, %s2132_s11   ;;  %v900_v12 = vpop.xlane.xlu2 %899  ;;  %v918_v21 = vpop.xlane.xlu0 %917  ;;  %v878_v13 = vand.u32 127, %v786_v63 }
 0x32e   : > { %v901_v49 = vrot.slane %v900_v12, 4  ;;  %v919_v50 = vrot.slane %v918_v21, 4  ;;  %s1019_s0 = scalar_lea.hbm %s2222_s8, %s1912_s9  ;;  %s400_s13 = scalar_lea.vmem [#allocation14], %s2008_s20 }
 0x32f   : > { %vm879_vm3 = vcmp.eq.s32.totalorder %v878_v13, 0  ;;  %vm895_vm4 = vcmp.eq.s32.totalorder %v878_v13, 1  ;;  %vm911_vm5 = vcmp.eq.s32.totalorder %v878_v13, 2  ;;  %vm929_vm6 = vcmp.eq.s32.totalorder %v878_v13, 3  ;;  %s1021_s2 = sshll.u32 %s400_s13, 4  ;;  %s1023_s16 = sshll.u32 %s1019_s0, 4  ;;  %s1022_s2 = int_to_ptr.vmem [resolvable:$true] %s1021_s2  ;;  %s1024_s16 = int_to_ptr.hbm [resolvable:$true] %s1023_s16 }
 0x330   : > { %v902_v51 = vadd.f32 %v901_v49, %v900_v12  ;;  %v920_v11 = vadd.f32 %v919_v50, %v918_v21  ;;  %s962_s1 = scalar_lea.sflag [#allocation15], %s2008_s20  ;;  %s1762_s23 = sshra.s32 %s1024_s16, 4  ;;  %s1763_s23 = int_to_ptr.hbm [resolvable:$true] %s1762_s23 }
 0x331   : > { %s1764_s4 = scalar_lea.hbm %s1763_s23, 1  ;;  %s1768_s24 = scalar_lea.hbm %s2222_s8, 2 }
 0x332   : > { %v903_v52 = vrot.slane %v902_v51, 2  ;;  %v921_v54 = vrot.slane %v920_v11, 2  ;;  %p1765_p0 = scmp.ne.s32.totalorder %s1763_s23, %s1764_s4  ;;  %p1769_p1 = scmp.lt.s32.totalorder %s1763_s23, %s2222_s8 }
 0x333   : > { %p1770_p4 = scmp.lt.s32.totalorder %s1768_s24, %s1764_s4 }
 0x334   : > { %v904_v56 = vadd.f32 %v903_v52, %v902_v51  ;;  %v922_v57 = vadd.f32 %v921_v54, %v920_v11  ;;  %p1766_p5 = pnand %p1765_p0, %p1978_p3 }
 0x335   : > { %p1771_p8 = por %p1770_p4, %p1769_p1 }
 0x336   : > { %v905_v61 = vrot.slane %v904_v56, 1  ;;  %v923_v1 = vrot.slane %v922_v57, 1  ;;  %p1767_p7 = pneg %p1766_p5 }
 0x338   : > { %v906_v4 = vadd.f32 %v905_v61, %v904_v56  ;;  %v924_v6 = vadd.f32 %v923_v1, %v922_v57  ;;  %p1772_p11 = pnand %p1771_p8, %p1767_p7 }
 0x377   : > { %v885_v53 = vpop.xlane.xlu1 %884 }
 0x378   : > { %v886_v55 = vrot.slane %v885_v53, 4 }
 0x37a   : > { %v887_v15 = vadd.f32 %v886_v55, %v885_v53 }
 0x37c   : > { %v888_v58 = vrot.slane %v887_v15, 2 }
 0x37e   : > { %v889_v59 = vadd.f32 %v888_v58, %v887_v15 }
 0x37f   : > { %v934_v60 = vpop.xlane.xlu1 %933 }
 0x380   : > { %v935_v62 = vrot.slane %v934_v60, 4  ;;  %v890_v0 = vrot.slane %v889_v59, 1 }
 0x382   : > { %v936_v2 = vadd.f32 %v935_v62, %v934_v60  ;;  %v891_v3 = vadd.f32 %v890_v0, %v889_v59 }
 0x384   : > { %v937_v5 = vrot.slane %v936_v2, 2  ;;  %1420 = vpush %v891_v3 }
 0x385   : > { %1422 = vpush %v906_v4 }
 0x386   : > { %v938_v7 = vadd.f32 %v937_v5, %v936_v2  ;;  %1424 = vpush %v924_v6 }
 0x388   : > { %v939_v8 = vrot.slane %v938_v7, 1 }
 0x38a   : > { %v940_v9 = vadd.f32 %v939_v8, %v938_v7 }
 0x38c   : > { %1426 = vpush %v940_v9 }
 0x3b5   : > { %s1421_s14 = spop %1420 }
 0x3b6   : > { %v893_v16 = vstv %s1421_s14  ;;  %s1423_s11 = spop %1422 }
 0x3b7   : > { %v894_v17 = vsel %vm879_vm3, %v893_v16, 0.0  ;;  %v908_v18 = vstv %s1423_s11  ;;  %s1425_s19 = spop %1424 }
 0x3b8   : > { %v909_v19 = vsel %vm895_vm4, %v908_v18, 0.0  ;;  %v926_v22 = vstv %s1425_s19 }
 0x3b9   : > { %v910_v20 = vadd.f32 %v909_v19, %v894_v17  ;;  %v927_v63 = vsel %vm911_vm5, %v926_v22, 0.0 }
 0x3bb   : > { %v928_v23 = vadd.f32 %v927_v63, %v910_v20 }
 0x3bd   : > { %s1427_s6 = spop %1426 }
 0x3be   : > { %v942_v24 = vstv %s1427_s6 }
 0x3bf   : > { %v943_v25 = vsel %vm929_vm6, %v942_v24, 0.0 }
 0x3c0   : > { %v944_v27 = vadd.f32 %v943_v25, %v928_v23 }
 0x3c2   : > { %945 = vst [vmem:[%s400_s13] sm:$0x1] %v944_v27 }
 0x3c3   : > { %1775 = shalt.err (!%p1772_p11)
}
 0x3c4   : > { %1445 = dma.vmem_to_hbm [thread:$0]  (%p1978_p3), %s1022_s2, 16, %s1024_s16, %s962_s1  }
 0x3c5 PF: > { %s1035_s20 = sand.u32 1, %s1818_s27   ;;  %p2246_p9 = scmp.ge.s32.totalorder %s1830_s30, 2 }
 0x3c6   : > { %s1036_s21 = scalar_lea.sflag [#allocation4], %s1035_s20 }
 0x3c7   : > { %p1465_p2 = pnand %p2246_p9, %p1928_p6 }
 0x3c9   : > { %p1466_p10 = pneg %p1465_p2 }
 0x3cb   : > { %1805 = dma.done.wait (%p1466_p10), %s1036_s21, 128  }
 0x3cc   : > { %1807 = vsyncadd (%p1466_p10), %s1036_s21, 4294967168  ;;  %s2247_s14 = sadd.s32 4294967294, %s1830_s30  }
 0x3cd   : > { %s1045_s11 = sand.u32 1, %s2247_s14  }
 0x3ce   : > { %s1046_s19 = scalar_lea.sflag [#allocation12], %s1045_s11 }
 0x3cf   : > { %1809 = dma.done.wait (%p1466_p10), %s1046_s19, 288  }
 0x3d0   : > { %1811 = vsyncadd (%p1466_p10), %s1046_s19, 4294967008  ;;  %s1066_s22 = scalar_lea.sflag [#allocation15], %s1035_s20 }
 0x3d1   : > { %1813 = dma.done.wait (%p1466_p10), %s1066_s22, 16  }
 0x3d2   : > { %1815 = vsyncadd (%p1466_p10), %s1066_s22, 4294967280  ;;  %p30_p3 = scmp.ge.s32.totalorder %s1965_s25, 4   ;;  %s2248_s27 = smov %s1822_s28 }
 0x3d3   : > { %s2249_s28 = smov %s1826_s29  ;;  %s2250_s29 = smov %s1974_s10 }
 0x3d4   : > { %s2251_s30 = smov %s1965_s25  ;;  %32 = sbr.rel (!%p30_p3) target bundleno = 18 (0x12), region = 146 }
 0x3d9   :  { %1071 = vsyncpa [#allocation3], 1 }
 0x3da   :  { %1073 = vsyncpa [#allocation3 + $0x1], 1 }
 0x3db   :  { %1074 = vsyncpa [#allocation6], 1 }
 0x3dc   :  { %1075 = vsyncpa [#allocation9], 1 }
 0x3dd   :  { %1076 = vsyncpa [#allocation4], 1 }
 0x3de   :  { %1078 = vsyncpa [#allocation4 + $0x1], 1 }
 0x3df   :  { %1079 = vsyncpa [#allocation12], 1 }
 0x3e0   :  { %1081 = vsyncpa [#allocation12 + $0x1], 1 }
 0x3e1   :  { %1082 = vsyncpa [#allocation15], 1 }
 0x3e2   :  { %1084 = vsyncpa [#allocation15 + $0x1], 1 }

</bundles_post_ra>
